<compile_context>
chip_gen: v6e
topology: v6e:2x2x1
jax: 0.10.0
libtpu: 0.0.40
codegen_flags: <defaults>
</compile_context>

<pallas_src>
import math

import jax
import jax.numpy as jnp
from jax.experimental import pallas as pl
from jax.experimental.pallas import tpu as pltpu

BN_EPS = 1e-5


# ----------------------------------------------------------------------------
# Pallas kernel: in-kernel im2col (shift + mask) + 9 accumulated MXU matmuls
# + folded-BN bias + ReLU, channels-first lane-dense output
# ----------------------------------------------------------------------------
def _make_kernel(W, tile_h):
    tile_hw = tile_h * W
    win_len = tile_hw + 2 * W + 2
    aligned = (tile_hw % 128 == 0)

    def kernel(x_ref, w_ref, b_ref, m_ref, o_ref):
        # x_ref: (Cin, Lp)        bf16  height-padded, flattened image (+1 zero guard
        #                               element at each end); resident per batch elem
        # w_ref: (9, Cout, Cin)   bf16  BN-scale-folded conv weights (resident)
        # b_ref: (Cout, 1)        f32   folded BN bias
        # m_ref: (2, tile_hw)     bf16  [left-edge valid, right-edge valid] column masks
        # o_ref: (Cout, tile_hw)  f32   output tile (channels-first, flat spatial)
        t = pl.program_id(1)
        base = t * tile_hw
        if aligned:
            base = pl.multiple_of(base, 128)
        # window holding all 9 shifted taps for this row tile
        win = x_ref[:, pl.ds(base, win_len)]                      # (Cin, win_len)
        mask_l = m_ref[0:1, :]
        mask_r = m_ref[1:2, :]
        for k in range(9):
            ky, kx = divmod(k, 3)
            off = ky * W + kx
            tap = win[:, off:off + tile_hw]                       # (Cin, tile_hw)
            if kx == 0:                                           # emulated left pad
                tap = tap * mask_l
            elif kx == 2:                                         # emulated right pad
                tap = tap * mask_r
            contrib = jnp.dot(w_ref[k], tap,
                              preferred_element_type=jnp.float32)  # (Cout, tile_hw)
            if k == 0:
                o_ref[...] = contrib
            else:
                o_ref[...] += contrib
        o_ref[...] = jnp.maximum(o_ref[...] + b_ref[...], 0.0)

    return kernel


def _pick_tile_h(N, H, W, max_tile_hw):
    # divisors of H whose row-tile is lane-aligned (or cover the full image)
    cands = [th for th in range(1, H + 1)
             if H % th == 0 and th * W <= max_tile_hw
             and ((th * W) % 128 == 0 or th == H)]
    if not cands:
        return H  # whole image per step (full-dim block is always legal)
    th = max(cands)
    if N == 1 and th == H:
        smaller = [c for c in cands if c < H]
        if smaller:
            th = max(smaller)   # keep >= 2 grid steps for v7x's two TensorCores
    return th


# ----------------------------------------------------------------------------
# Wrapper: NCHW in / NCHW out, matching the PyTorch module
# ----------------------------------------------------------------------------
def block_of_dmt11_forward(x_nchw, params, *, max_tile_hw=512):
    w, conv_b, gamma, beta, mean, var = params
    N, Cin, H, W = x_nchw.shape
    Cout = w.shape[0]
    HW = H * W
    Lp = (H + 2) * W + 2

    # --- eval-mode BatchNorm fold: scale into the weights, bias stays f32 ---
    scale = gamma / jnp.sqrt(var + BN_EPS)                                   # (Cout,)
    bias = (beta + scale * (conv_b - mean)).astype(jnp.float32).reshape(Cout, 1)
    w_mat = jnp.transpose(w * scale[:, None, None, None], (2, 3, 0, 1))     # (3,3,Cout,Cin)
    w_mat = w_mat.reshape(9, Cout, Cin).astype(jnp.bfloat16)

    # --- layout glue (one small fused XLA pass, NO transposes): cast bf16,
    #     pad H by 1 row each side, flatten spatial, add 1 zero guard element
    #     at each end of the flat axis (for the kx=0 / kx=2 shifted taps) ---
    xq = jnp.pad(x_nchw.astype(jnp.bfloat16), ((0, 0), (0, 0), (1, 1), (0, 0)))
    xq = xq.reshape(N, Cin, (H + 2) * W)
    xq = jnp.pad(xq, ((0, 0), (0, 0), (1, 1)))                               # (N, Cin, Lp)

    tile_h = _pick_tile_h(N, H, W, max_tile_hw)
    tile_hw = tile_h * W
    T = H // tile_h

    # column-edge masks: width padding is emulated by shift + mask
    col = jnp.arange(tile_hw, dtype=jnp.int32) % W
    edge = jnp.stack([col != 0, col != (W - 1)]).astype(jnp.bfloat16)        # (2, tile_hw)

    kernel = _make_kernel(W, tile_h)

    out_flat = pl.pallas_call(
        kernel,
        out_shape=jax.ShapeDtypeStruct((N, Cout, HW), jnp.float32),
        grid=(N, T),
        in_specs=[
            pl.BlockSpec((None, Cin, Lp), lambda n, t: (n, 0, 0)),   # image resident per n
            pl.BlockSpec((9, Cout, Cin), lambda n, t: (0, 0, 0)),    # weights resident
            pl.BlockSpec((Cout, 1), lambda n, t: (0, 0)),            # bias resident
            pl.BlockSpec((2, tile_hw), lambda n, t: (0, 0)),         # edge masks resident
        ],
        out_specs=pl.BlockSpec((None, Cout, tile_hw), lambda n, t: (n, 0, t)),
        compiler_params=pltpu.CompilerParams(
            dimension_semantics=("parallel", "parallel")),
        cost_estimate=pl.CostEstimate(
            flops=2 * N * HW * 9 * Cin * Cout,
            transcendentals=0,
            bytes_accessed=(N * Cin * Lp * 2 + 9 * Cout * Cin * 2
                            + Cout * 4 + 2 * tile_hw * 2 + N * Cout * HW * 4)),
    )(xq, w_mat, bias, edge)

    # (N, Cout, H*W) is already NCHW memory order -> free reshape, no transpose
    return out_flat.reshape(N, Cout, H, W)


# ----------------------------------------------------------------------------
# Pure-JAX reference (same eval-mode BN fold) for a correctness check
# ----------------------------------------------------------------------------
def _reference_forward(x_nchw, params):
    w, conv_b, gamma, beta, mean, var = params
    y = jax.lax.conv_general_dilated(
        x_nchw, w, window_strides=(1, 1), padding=((1, 1), (1, 1)),
        dimension_numbers=("NCHW", "OIHW", "NCHW"))
    y = y + conv_b.reshape(1, -1, 1, 1)
    scale = gamma / jnp.sqrt(var + BN_EPS)
    y = (scale.reshape(1, -1, 1, 1) * (y - mean.reshape(1, -1, 1, 1))
         + beta.reshape(1, -1, 1, 1))
    return jnp.maximum(y, 0.0)


if __name__ == "__main__":
    key = jax.random.PRNGKey(0)
    kx, kw, kb, kg, kbe, km, kv = jax.random.split(key, 7)

    Cin = Cout = 64
    x = jax.random.normal(kx, (2, Cin, 16, 16), jnp.float32)    # NCHW

    fan_in = Cin * 9
    w = jax.random.normal(kw, (Cout, Cin, 3, 3), jnp.float32) / math.sqrt(fan_in)
    conv_b = 0.01 * jax.random.normal(kb, (Cout,), jnp.float32)
    gamma = 1.0 + 0.1 * jax.random.normal(kg, (Cout,), jnp.float32)
    beta = 0.01 * jax.random.normal(kbe, (Cout,), jnp.float32)
    mean = 0.01 * jax.random.normal(km, (Cout,), jnp.float32)
    var = 1.0 + 0.1 * jnp.abs(jax.random.normal(kv, (Cout,), jnp.float32))
    params = (w, conv_b, gamma, beta, mean, var)

    fwd = jax.jit(block_of_dmt11_forward)
    out = fwd(x, params)
    jax.block_until_ready(out)

    assert out.shape == (2, Cout, 16, 16), out.shape
    assert bool(jnp.all(jnp.isfinite(out)))

    ref = _reference_forward(x, params)
    err = float(jnp.max(jnp.abs(out - ref)))
    assert err < 0.15, f"max abs err vs reference: {err}"

    print("KERNEL_OK")
</pallas_src>

<mosaic_0001>
module attributes {stable_mosaic.version = 11 : i64} {
  func.func @kernel(%arg0: i32, %arg1: i32, %arg2: memref<1x64x290xbf16, #tpu.memory_space<vmem>>, %arg3: memref<9x64x64xbf16, #tpu.memory_space<vmem>>, %arg4: memref<64x1xf32, #tpu.memory_space<vmem>>, %arg5: memref<2x256xbf16, #tpu.memory_space<vmem>>, %arg6: memref<1x64x256xf32, #tpu.memory_space<vmem>>) attributes {dimension_semantics = [#tpu.dimension_semantics<parallel>, #tpu.dimension_semantics<parallel>], iteration_bounds = array<i64: 2, 1>, scalar_prefetch = 0 : i64, scratch_operands = 0 : i64, tpu.core_type = #tpu.core_type<tc>, window_params = [{transform_indices = @transform_0, window_bounds = array<i64: 1, 64, 290>}, {pipeline_mode = #tpu.pipeline_mode<synchronous>, transform_indices = @transform_1, window_bounds = array<i64: 9, 64, 64>}, {pipeline_mode = #tpu.pipeline_mode<synchronous>, transform_indices = @transform_2, window_bounds = array<i64: 64, 1>}, {pipeline_mode = #tpu.pipeline_mode<synchronous>, transform_indices = @transform_3, window_bounds = array<i64: 2, 256>}, {transform_indices = @transform_4, window_bounds = array<i64: 1, 64, 256>}]} {
    %c256_i32 = arith.constant 256 : i32
    %0 = arith.muli %arg1, %c256_i32 : i32
    %1 = tpu.assume_multiple %0, 128 : i32
    %c0 = arith.constant 0 : index
    %c0_0 = arith.constant 0 : index
    %2 = arith.index_cast %1 : i32 to index
    %3 = vector.load %arg2[%c0, %c0_0, %2] : memref<1x64x290xbf16, #tpu.memory_space<vmem>>, vector<1x64x290xbf16>
    %4 = vector.shape_cast %3 : vector<1x64x290xbf16> to vector<64x290xbf16>
    %c0_1 = arith.constant 0 : index
    %c0_2 = arith.constant 0 : index
    %5 = vector.load %arg5[%c0_1, %c0_2] : memref<2x256xbf16, #tpu.memory_space<vmem>>, vector<1x256xbf16>
    %c1 = arith.constant 1 : index
    %c0_3 = arith.constant 0 : index
    %6 = vector.load %arg5[%c1, %c0_3] : memref<2x256xbf16, #tpu.memory_space<vmem>>, vector<1x256xbf16>
    %7 = vector.extract_strided_slice %4 {offsets = [0, 0], sizes = [64, 256], strides = [1, 1]} : vector<64x290xbf16> to vector<64x256xbf16>
    %8 = vector.broadcast %5 : vector<1x256xbf16> to vector<64x256xbf16>
    %9 = arith.mulf %7, %8 : vector<64x256xbf16>
    %c0_4 = arith.constant 0 : index
    %c0_5 = arith.constant 0 : index
    %c0_6 = arith.constant 0 : index
    %10 = vector.load %arg3[%c0_4, %c0_5, %c0_6] : memref<9x64x64xbf16, #tpu.memory_space<vmem>>, vector<1x64x64xbf16>
    %11 = vector.shape_cast %10 : vector<1x64x64xbf16> to vector<64x64xbf16>
    %cst = arith.constant dense<0.000000e+00> : vector<64x256xf32>
    %12 = tpu.matmul %11, %9, %cst {dimension_numbers = #tpu.dot_dimension_numbers<[1], [0], [0], [1], [0, 0, 1, 1], [], []>} : vector<64x64xbf16>, vector<64x256xbf16>, vector<64x256xf32> -> vector<64x256xf32>
    %c0_7 = arith.constant 0 : index
    %c0_8 = arith.constant 0 : index
    %c0_9 = arith.constant 0 : index
    %13 = vector.load %arg6[%c0_7, %c0_8, %c0_9] : memref<1x64x256xf32, #tpu.memory_space<vmem>>, vector<1x64x256xf32>
    %14 = vector.shape_cast %13 : vector<1x64x256xf32> to vector<64x256xf32>
    %15 = vector.shape_cast %12 : vector<64x256xf32> to vector<1x64x256xf32>
    tpu.vector_store %arg6[%c0_7, %c0_8, %c0_9], %15 {strides = array<i32>} : memref<1x64x256xf32, #tpu.memory_space<vmem>>, vector<1x64x256xf32>,
    %16 = vector.extract_strided_slice %4 {offsets = [0, 1], sizes = [64, 256], strides = [1, 1]} : vector<64x290xbf16> to vector<64x256xbf16>
    %c1_10 = arith.constant 1 : index
    %c0_11 = arith.constant 0 : index
    %c0_12 = arith.constant 0 : index
    %17 = vector.load %arg3[%c1_10, %c0_11, %c0_12] : memref<9x64x64xbf16, #tpu.memory_space<vmem>>, vector<1x64x64xbf16>
    %18 = vector.shape_cast %17 : vector<1x64x64xbf16> to vector<64x64xbf16>
    %cst_13 = arith.constant dense<0.000000e+00> : vector<64x256xf32>
    %19 = tpu.matmul %18, %16, %cst_13 {dimension_numbers = #tpu.dot_dimension_numbers<[1], [0], [0], [1], [0, 0, 1, 1], [], []>} : vector<64x64xbf16>, vector<64x256xbf16>, vector<64x256xf32> -> vector<64x256xf32>
    %c0_14 = arith.constant 0 : index
    %c0_15 = arith.constant 0 : index
    %c0_16 = arith.constant 0 : index
    %20 = vector.load %arg6[%c0_14, %c0_15, %c0_16] : memref<1x64x256xf32, #tpu.memory_space<vmem>>, vector<1x64x256xf32>
    %21 = vector.shape_cast %20 : vector<1x64x256xf32> to vector<64x256xf32>
    %22 = arith.addf %21, %19 : vector<64x256xf32>
    %c0_17 = arith.constant 0 : index
    %c0_18 = arith.constant 0 : index
    %c0_19 = arith.constant 0 : index
    %23 = vector.load %arg6[%c0_17, %c0_18, %c0_19] : memref<1x64x256xf32, #tpu.memory_space<vmem>>, vector<1x64x256xf32>
    %24 = vector.shape_cast %23 : vector<1x64x256xf32> to vector<64x256xf32>
    %25 = vector.shape_cast %22 : vector<64x256xf32> to vector<1x64x256xf32>
    tpu.vector_store %arg6[%c0_17, %c0_18, %c0_19], %25 {strides = array<i32>} : memref<1x64x256xf32, #tpu.memory_space<vmem>>, vector<1x64x256xf32>,
    %26 = vector.extract_strided_slice %4 {offsets = [0, 2], sizes = [64, 256], strides = [1, 1]} : vector<64x290xbf16> to vector<64x256xbf16>
    %27 = vector.broadcast %6 : vector<1x256xbf16> to vector<64x256xbf16>
    %28 = arith.mulf %26, %27 : vector<64x256xbf16>
    %c2 = arith.constant 2 : index
    %c0_20 = arith.constant 0 : index
    %c0_21 = arith.constant 0 : index
    %29 = vector.load %arg3[%c2, %c0_20, %c0_21] : memref<9x64x64xbf16, #tpu.memory_space<vmem>>, vector<1x64x64xbf16>
    %30 = vector.shape_cast %29 : vector<1x64x64xbf16> to vector<64x64xbf16>
    %cst_22 = arith.constant dense<0.000000e+00> : vector<64x256xf32>
    %31 = tpu.matmul %30, %28, %cst_22 {dimension_numbers = #tpu.dot_dimension_numbers<[1], [0], [0], [1], [0, 0, 1, 1], [], []>} : vector<64x64xbf16>, vector<64x256xbf16>, vector<64x256xf32> -> vector<64x256xf32>
    %c0_23 = arith.constant 0 : index
    %c0_24 = arith.constant 0 : index
    %c0_25 = arith.constant 0 : index
    %32 = vector.load %arg6[%c0_23, %c0_24, %c0_25] : memref<1x64x256xf32, #tpu.memory_space<vmem>>, vector<1x64x256xf32>
    %33 = vector.shape_cast %32 : vector<1x64x256xf32> to vector<64x256xf32>
    %34 = arith.addf %33, %31 : vector<64x256xf32>
    %c0_26 = arith.constant 0 : index
    %c0_27 = arith.constant 0 : index
    %c0_28 = arith.constant 0 : index
    %35 = vector.load %arg6[%c0_26, %c0_27, %c0_28] : memref<1x64x256xf32, #tpu.memory_space<vmem>>, vector<1x64x256xf32>
    %36 = vector.shape_cast %35 : vector<1x64x256xf32> to vector<64x256xf32>
    %37 = vector.shape_cast %34 : vector<64x256xf32> to vector<1x64x256xf32>
    tpu.vector_store %arg6[%c0_26, %c0_27, %c0_28], %37 {strides = array<i32>} : memref<1x64x256xf32, #tpu.memory_space<vmem>>, vector<1x64x256xf32>,
    %38 = vector.extract_strided_slice %4 {offsets = [0, 16], sizes = [64, 256], strides = [1, 1]} : vector<64x290xbf16> to vector<64x256xbf16>
    %39 = vector.broadcast %5 : vector<1x256xbf16> to vector<64x256xbf16>
    %40 = arith.mulf %38, %39 : vector<64x256xbf16>
    %c3 = arith.constant 3 : index
    %c0_29 = arith.constant 0 : index
    %c0_30 = arith.constant 0 : index
    %41 = vector.load %arg3[%c3, %c0_29, %c0_30] : memref<9x64x64xbf16, #tpu.memory_space<vmem>>, vector<1x64x64xbf16>
    %42 = vector.shape_cast %41 : vector<1x64x64xbf16> to vector<64x64xbf16>
    %cst_31 = arith.constant dense<0.000000e+00> : vector<64x256xf32>
    %43 = tpu.matmul %42, %40, %cst_31 {dimension_numbers = #tpu.dot_dimension_numbers<[1], [0], [0], [1], [0, 0, 1, 1], [], []>} : vector<64x64xbf16>, vector<64x256xbf16>, vector<64x256xf32> -> vector<64x256xf32>
    %c0_32 = arith.constant 0 : index
    %c0_33 = arith.constant 0 : index
    %c0_34 = arith.constant 0 : index
    %44 = vector.load %arg6[%c0_32, %c0_33, %c0_34] : memref<1x64x256xf32, #tpu.memory_space<vmem>>, vector<1x64x256xf32>
    %45 = vector.shape_cast %44 : vector<1x64x256xf32> to vector<64x256xf32>
    %46 = arith.addf %45, %43 : vector<64x256xf32>
    %c0_35 = arith.constant 0 : index
    %c0_36 = arith.constant 0 : index
    %c0_37 = arith.constant 0 : index
    %47 = vector.load %arg6[%c0_35, %c0_36, %c0_37] : memref<1x64x256xf32, #tpu.memory_space<vmem>>, vector<1x64x256xf32>
    %48 = vector.shape_cast %47 : vector<1x64x256xf32> to vector<64x256xf32>
    %49 = vector.shape_cast %46 : vector<64x256xf32> to vector<1x64x256xf32>
    tpu.vector_store %arg6[%c0_35, %c0_36, %c0_37], %49 {strides = array<i32>} : memref<1x64x256xf32, #tpu.memory_space<vmem>>, vector<1x64x256xf32>,
    %50 = vector.extract_strided_slice %4 {offsets = [0, 17], sizes = [64, 256], strides = [1, 1]} : vector<64x290xbf16> to vector<64x256xbf16>
    %c4 = arith.constant 4 : index
    %c0_38 = arith.constant 0 : index
    %c0_39 = arith.constant 0 : index
    %51 = vector.load %arg3[%c4, %c0_38, %c0_39] : memref<9x64x64xbf16, #tpu.memory_space<vmem>>, vector<1x64x64xbf16>
    %52 = vector.shape_cast %51 : vector<1x64x64xbf16> to vector<64x64xbf16>
    %cst_40 = arith.constant dense<0.000000e+00> : vector<64x256xf32>
    %53 = tpu.matmul %52, %50, %cst_40 {dimension_numbers = #tpu.dot_dimension_numbers<[1], [0], [0], [1], [0, 0, 1, 1], [], []>} : vector<64x64xbf16>, vector<64x256xbf16>, vector<64x256xf32> -> vector<64x256xf32>
    %c0_41 = arith.constant 0 : index
    %c0_42 = arith.constant 0 : index
    %c0_43 = arith.constant 0 : index
    %54 = vector.load %arg6[%c0_41, %c0_42, %c0_43] : memref<1x64x256xf32, #tpu.memory_space<vmem>>, vector<1x64x256xf32>
    %55 = vector.shape_cast %54 : vector<1x64x256xf32> to vector<64x256xf32>
    %56 = arith.addf %55, %53 : vector<64x256xf32>
    %c0_44 = arith.constant 0 : index
    %c0_45 = arith.constant 0 : index
    %c0_46 = arith.constant 0 : index
    %57 = vector.load %arg6[%c0_44, %c0_45, %c0_46] : memref<1x64x256xf32, #tpu.memory_space<vmem>>, vector<1x64x256xf32>
    %58 = vector.shape_cast %57 : vector<1x64x256xf32> to vector<64x256xf32>
    %59 = vector.shape_cast %56 : vector<64x256xf32> to vector<1x64x256xf32>
    tpu.vector_store %arg6[%c0_44, %c0_45, %c0_46], %59 {strides = array<i32>} : memref<1x64x256xf32, #tpu.memory_space<vmem>>, vector<1x64x256xf32>,
    %60 = vector.extract_strided_slice %4 {offsets = [0, 18], sizes = [64, 256], strides = [1, 1]} : vector<64x290xbf16> to vector<64x256xbf16>
    %61 = vector.broadcast %6 : vector<1x256xbf16> to vector<64x256xbf16>
    %62 = arith.mulf %60, %61 : vector<64x256xbf16>
    %c5 = arith.constant 5 : index
    %c0_47 = arith.constant 0 : index
    %c0_48 = arith.constant 0 : index
    %63 = vector.load %arg3[%c5, %c0_47, %c0_48] : memref<9x64x64xbf16, #tpu.memory_space<vmem>>, vector<1x64x64xbf16>
    %64 = vector.shape_cast %63 : vector<1x64x64xbf16> to vector<64x64xbf16>
    %cst_49 = arith.constant dense<0.000000e+00> : vector<64x256xf32>
    %65 = tpu.matmul %64, %62, %cst_49 {dimension_numbers = #tpu.dot_dimension_numbers<[1], [0], [0], [1], [0, 0, 1, 1], [], []>} : vector<64x64xbf16>, vector<64x256xbf16>, vector<64x256xf32> -> vector<64x256xf32>
    %c0_50 = arith.constant 0 : index
    %c0_51 = arith.constant 0 : index
    %c0_52 = arith.constant 0 : index
    %66 = vector.load %arg6[%c0_50, %c0_51, %c0_52] : memref<1x64x256xf32, #tpu.memory_space<vmem>>, vector<1x64x256xf32>
    %67 = vector.shape_cast %66 : vector<1x64x256xf32> to vector<64x256xf32>
    %68 = arith.addf %67, %65 : vector<64x256xf32>
    %c0_53 = arith.constant 0 : index
    %c0_54 = arith.constant 0 : index
    %c0_55 = arith.constant 0 : index
    %69 = vector.load %arg6[%c0_53, %c0_54, %c0_55] : memref<1x64x256xf32, #tpu.memory_space<vmem>>, vector<1x64x256xf32>
    %70 = vector.shape_cast %69 : vector<1x64x256xf32> to vector<64x256xf32>
    %71 = vector.shape_cast %68 : vector<64x256xf32> to vector<1x64x256xf32>
    tpu.vector_store %arg6[%c0_53, %c0_54, %c0_55], %71 {strides = array<i32>} : memref<1x64x256xf32, #tpu.memory_space<vmem>>, vector<1x64x256xf32>,
    %72 = vector.extract_strided_slice %4 {offsets = [0, 32], sizes = [64, 256], strides = [1, 1]} : vector<64x290xbf16> to vector<64x256xbf16>
    %73 = vector.broadcast %5 : vector<1x256xbf16> to vector<64x256xbf16>
    %74 = arith.mulf %72, %73 : vector<64x256xbf16>
    %c6 = arith.constant 6 : index
    %c0_56 = arith.constant 0 : index
    %c0_57 = arith.constant 0 : index
    %75 = vector.load %arg3[%c6, %c0_56, %c0_57] : memref<9x64x64xbf16, #tpu.memory_space<vmem>>, vector<1x64x64xbf16>
    %76 = vector.shape_cast %75 : vector<1x64x64xbf16> to vector<64x64xbf16>
    %cst_58 = arith.constant dense<0.000000e+00> : vector<64x256xf32>
    %77 = tpu.matmul %76, %74, %cst_58 {dimension_numbers = #tpu.dot_dimension_numbers<[1], [0], [0], [1], [0, 0, 1, 1], [], []>} : vector<64x64xbf16>, vector<64x256xbf16>, vector<64x256xf32> -> vector<64x256xf32>
    %c0_59 = arith.constant 0 : index
    %c0_60 = arith.constant 0 : index
    %c0_61 = arith.constant 0 : index
    %78 = vector.load %arg6[%c0_59, %c0_60, %c0_61] : memref<1x64x256xf32, #tpu.memory_space<vmem>>, vector<1x64x256xf32>
    %79 = vector.shape_cast %78 : vector<1x64x256xf32> to vector<64x256xf32>
    %80 = arith.addf %79, %77 : vector<64x256xf32>
    %c0_62 = arith.constant 0 : index
    %c0_63 = arith.constant 0 : index
    %c0_64 = arith.constant 0 : index
    %81 = vector.load %arg6[%c0_62, %c0_63, %c0_64] : memref<1x64x256xf32, #tpu.memory_space<vmem>>, vector<1x64x256xf32>
    %82 = vector.shape_cast %81 : vector<1x64x256xf32> to vector<64x256xf32>
    %83 = vector.shape_cast %80 : vector<64x256xf32> to vector<1x64x256xf32>
    tpu.vector_store %arg6[%c0_62, %c0_63, %c0_64], %83 {strides = array<i32>} : memref<1x64x256xf32, #tpu.memory_space<vmem>>, vector<1x64x256xf32>,
    %84 = vector.extract_strided_slice %4 {offsets = [0, 33], sizes = [64, 256], strides = [1, 1]} : vector<64x290xbf16> to vector<64x256xbf16>
    %c7 = arith.constant 7 : index
    %c0_65 = arith.constant 0 : index
    %c0_66 = arith.constant 0 : index
    %85 = vector.load %arg3[%c7, %c0_65, %c0_66] : memref<9x64x64xbf16, #tpu.memory_space<vmem>>, vector<1x64x64xbf16>
    %86 = vector.shape_cast %85 : vector<1x64x64xbf16> to vector<64x64xbf16>
    %cst_67 = arith.constant dense<0.000000e+00> : vector<64x256xf32>
    %87 = tpu.matmul %86, %84, %cst_67 {dimension_numbers = #tpu.dot_dimension_numbers<[1], [0], [0], [1], [0, 0, 1, 1], [], []>} : vector<64x64xbf16>, vector<64x256xbf16>, vector<64x256xf32> -> vector<64x256xf32>
    %c0_68 = arith.constant 0 : index
    %c0_69 = arith.constant 0 : index
    %c0_70 = arith.constant 0 : index
    %88 = vector.load %arg6[%c0_68, %c0_69, %c0_70] : memref<1x64x256xf32, #tpu.memory_space<vmem>>, vector<1x64x256xf32>
    %89 = vector.shape_cast %88 : vector<1x64x256xf32> to vector<64x256xf32>
    %90 = arith.addf %89, %87 : vector<64x256xf32>
    %c0_71 = arith.constant 0 : index
    %c0_72 = arith.constant 0 : index
    %c0_73 = arith.constant 0 : index
    %91 = vector.load %arg6[%c0_71, %c0_72, %c0_73] : memref<1x64x256xf32, #tpu.memory_space<vmem>>, vector<1x64x256xf32>
    %92 = vector.shape_cast %91 : vector<1x64x256xf32> to vector<64x256xf32>
    %93 = vector.shape_cast %90 : vector<64x256xf32> to vector<1x64x256xf32>
    tpu.vector_store %arg6[%c0_71, %c0_72, %c0_73], %93 {strides = array<i32>} : memref<1x64x256xf32, #tpu.memory_space<vmem>>, vector<1x64x256xf32>,
    %94 = vector.extract_strided_slice %4 {offsets = [0, 34], sizes = [64, 256], strides = [1, 1]} : vector<64x290xbf16> to vector<64x256xbf16>
    %95 = vector.broadcast %6 : vector<1x256xbf16> to vector<64x256xbf16>
    %96 = arith.mulf %94, %95 : vector<64x256xbf16>
    %c8 = arith.constant 8 : index
    %c0_74 = arith.constant 0 : index
    %c0_75 = arith.constant 0 : index
    %97 = vector.load %arg3[%c8, %c0_74, %c0_75] : memref<9x64x64xbf16, #tpu.memory_space<vmem>>, vector<1x64x64xbf16>
    %98 = vector.shape_cast %97 : vector<1x64x64xbf16> to vector<64x64xbf16>
    %cst_76 = arith.constant dense<0.000000e+00> : vector<64x256xf32>
    %99 = tpu.matmul %98, %96, %cst_76 {dimension_numbers = #tpu.dot_dimension_numbers<[1], [0], [0], [1], [0, 0, 1, 1], [], []>} : vector<64x64xbf16>, vector<64x256xbf16>, vector<64x256xf32> -> vector<64x256xf32>
    %c0_77 = arith.constant 0 : index
    %c0_78 = arith.constant 0 : index
    %c0_79 = arith.constant 0 : index
    %100 = vector.load %arg6[%c0_77, %c0_78, %c0_79] : memref<1x64x256xf32, #tpu.memory_space<vmem>>, vector<1x64x256xf32>
    %101 = vector.shape_cast %100 : vector<1x64x256xf32> to vector<64x256xf32>
    %102 = arith.addf %101, %99 : vector<64x256xf32>
    %c0_80 = arith.constant 0 : index
    %c0_81 = arith.constant 0 : index
    %c0_82 = arith.constant 0 : index
    %103 = vector.load %arg6[%c0_80, %c0_81, %c0_82] : memref<1x64x256xf32, #tpu.memory_space<vmem>>, vector<1x64x256xf32>
    %104 = vector.shape_cast %103 : vector<1x64x256xf32> to vector<64x256xf32>
    %105 = vector.shape_cast %102 : vector<64x256xf32> to vector<1x64x256xf32>
    tpu.vector_store %arg6[%c0_80, %c0_81, %c0_82], %105 {strides = array<i32>} : memref<1x64x256xf32, #tpu.memory_space<vmem>>, vector<1x64x256xf32>,
    %c0_83 = arith.constant 0 : index
    %c0_84 = arith.constant 0 : index
    %c0_85 = arith.constant 0 : index
    %106 = vector.load %arg6[%c0_83, %c0_84, %c0_85] : memref<1x64x256xf32, #tpu.memory_space<vmem>>, vector<1x64x256xf32>
    %107 = vector.shape_cast %106 : vector<1x64x256xf32> to vector<64x256xf32>
    %c0_86 = arith.constant 0 : index
    %c0_87 = arith.constant 0 : index
    %108 = vector.load %arg4[%c0_86, %c0_87] : memref<64x1xf32, #tpu.memory_space<vmem>>, vector<64x1xf32>
    %109 = vector.broadcast %108 : vector<64x1xf32> to vector<64x256xf32>
    %110 = arith.addf %107, %109 : vector<64x256xf32>
    %cst_88 = arith.constant 0.000000e+00 : f32
    %111 = vector.broadcast %cst_88 : f32 to vector<64x256xf32>
    %112 = arith.maximumf %110, %111 : vector<64x256xf32>
    %c0_89 = arith.constant 0 : index
    %c0_90 = arith.constant 0 : index
    %c0_91 = arith.constant 0 : index
    %113 = vector.load %arg6[%c0_89, %c0_90, %c0_91] : memref<1x64x256xf32, #tpu.memory_space<vmem>>, vector<1x64x256xf32>
    %114 = vector.shape_cast %113 : vector<1x64x256xf32> to vector<64x256xf32>
    %115 = vector.shape_cast %112 : vector<64x256xf32> to vector<1x64x256xf32>
    tpu.vector_store %arg6[%c0_89, %c0_90, %c0_91], %115 {strides = array<i32>} : memref<1x64x256xf32, #tpu.memory_space<vmem>>, vector<1x64x256xf32>,
    return
  }
  func.func @transform_0(%arg0: i32, %arg1: i32) -> (i32, i32, i32) {
    %c0_i32 = arith.constant 0 : i32
    %c0_i32_0 = arith.constant 0 : i32
    %c0_i32_1 = arith.constant 0 : i32
    return %arg0, %c0_i32, %c0_i32_0 : i32, i32, i32
  }
  func.func @transform_1(%arg0: i32, %arg1: i32) -> (i32, i32, i32) {
    %c0_i32 = arith.constant 0 : i32
    %c0_i32_0 = arith.constant 0 : i32
    %c0_i32_1 = arith.constant 0 : i32
    %c0_i32_2 = arith.constant 0 : i32
    return %c0_i32, %c0_i32_0, %c0_i32_1 : i32, i32, i32
  }
  func.func @transform_2(%arg0: i32, %arg1: i32) -> (i32, i32) {
    %c0_i32 = arith.constant 0 : i32
    %c0_i32_0 = arith.constant 0 : i32
    %c0_i32_1 = arith.constant 0 : i32
    return %c0_i32, %c0_i32_0 : i32, i32
  }
  func.func @transform_3(%arg0: i32, %arg1: i32) -> (i32, i32) {
    %c0_i32 = arith.constant 0 : i32
    %c0_i32_0 = arith.constant 0 : i32
    %c0_i32_1 = arith.constant 0 : i32
    return %c0_i32, %c0_i32_0 : i32, i32
  }
  func.func @transform_4(%arg0: i32, %arg1: i32) -> (i32, i32, i32) {
    %c0_i32 = arith.constant 0 : i32
    %c0_i32_0 = arith.constant 0 : i32
    return %arg0, %c0_i32, %arg1 : i32, i32, i32
  }
}

</mosaic_0001>

<bundles_post_ra>
// kernel: block_of_dmt11_forward.1
= control target key start
LH: loop header
LB: loop body
LE: loop exit
PB: predicated region body
PF: predicated region fallthrough
CT: control target
= control target key end

     0   :  { %s3122_s15 = smov 0   ;;  %s3124_s16 = smov 0   ;;  %s4154_s0 = inlined_call_operand.vmem [shape: bf16[2,64,290], index: 0, kind: input, shape index: {}]   ;;  %s4155_s1 = inlined_call_operand.vmem [shape: bf16[9,64,64], index: 1, kind: input, shape index: {}]   ;;  %s4156_s2 = inlined_call_operand.vmem [shape: f32[64,1], index: 2, kind: input, shape index: {}]   ;;  %s4157_s3 = inlined_call_operand.vmem [shape: bf16[2,256], index: 3, kind: input, shape index: {}]   ;;  %s4158_s4 = inlined_call_operand.vmem [shape: f32[2,64,256], index: 4, kind: output, shape index: {}]  }
   0x1   :  { %s3126_s17 = smov 0  }
   0x2 LB: > { %s26_s18 = sadd.s32 1, %s3076_s16  ;;  %p2734_p0 = scmp.ge.s32.totalorder %s3080_s17, 1  ;;  %s3080_s17 = sphi %s3126_s17, %s14_s17   ;;  %s3076_s16 = sphi %s3124_s16, %s4216_s16   ;;  %s3072_s15 = sphi %s3122_s15, %s4215_s15  }
   0x3   : > { %p28_p1 = scmp.ge.s32.totalorder %s26_s18, 2  ;;  %p176_p2 = scmp.lt.s32.totalorder %s3080_s17, 3 }
   0x5   : > { %s4218_s18 = smov (%p28_p1, %s26_s18), 0  ;;  %p177_p3 = pnand %p2734_p0, %p176_p2 }
   0x7   : > { %180 = sbr.rel (%p177_p3) target bundleno = 644 (0x284), region = 36 }
   0xc   : > { %p206_p4 = scmp.lt.s32.totalorder %s3072_s15, 1  ;;  %v256_v0 = vlaneseq  ;;  %v2738_v1 = vld.sshfl [vmem:[%s4157_s3] sm:$0x11 pattern:$0x75316420]  ;;  %v3083_v5 = vmov 0  }
   0xd   : > { %v3082_v2 = vmov 1966171168   ;;  %428 = vmatprep.mubr.bf16.mxu1 %v3083_v5  ;;  %408 = vmatprep.mubr.bf16.mxu0 %v3083_v5  ;;  %v252_v6 = vcombine.high %v2738_v1, %v2738_v1  ;;  %s3084_s25 = smov 127   ;;  %s3085_s26 = smov 16   ;;  %vm363_vm0 = vcmask 523264   ;;  %vm570_vm1 = vcmask 1039360  }
   0xe   : > { %s4220_s15 = smov (!%p206_p4, %s3072_s15), 1  ;;  %v254_v3 = vunpack.c.l.s4 %v3082_v2  ;;  %v257_v4 = vshrl.u32 %v256_v0, 7  ;;  %3008 = vset.pattern.permute.xlu1 %v3083_v5  ;;  %3009 = vset.pattern.permute.xlu0 %v3083_v5  ;;  %s3086_s27 = smov 2   ;;  %v3022_v2 = vld [vmem:[%s4155_s1 + $0x10] sm:$0xff]   ;;  %vm1020_vm2 = vcmask 130048   ;;  %vm742_vm3 = vcmask 15360  }
   0xf   : > { %s2968_s21 = smul.u32 96, %s4220_s15  ;;  %s3087_s28 = smov 18   ;;  %vm1348_vm4 = vcmask 908288   ;;  %vm1779_vm5 = vcmask 261120   ;;  %vm1501_vm6 = vcmask 146432   ;;  %vm2260_vm7 = vcmask 277504  }
  0x10   : > { %v255_v7 = vunpack.c.0.s8 %v254_v3  ;;  %v272_v18 = vsub.s32 0, %v257_v4  ;;  %s3088_s5 = smov 32   ;;  %s3089_s6 = smov 34   ;;  %vm1145_vm8 = vcmask 916480   ;;  %vm867_vm9 = vcmask 1031168  }
  0x11   : > { %s3153_s24 = scalar_lea.vmem %s4154_s0, %s2968_s21  ;;  %s3090_s7 = smov 111   ;;  %vm1626_vm10 = vcmask 900096   ;;  %vm1904_vm11 = vcmask 785408   ;;  %vm2107_vm12 = vcmask 777216   ;;  %vm2385_vm13 = vcmask 769024  }
  0x12   : > { %v258_v8 = vsub.s32 %v255_v7, %v257_v4  ;;  %v3156_v9 = vld [vmem:[%s3153_s24 + $0x50] sm:$0xf]  ;;  %v3159_v10 = vld [vmem:[%s3153_s24 + $0x5c] sm:$0xf]  ;;  %v3162_v11 = vld [vmem:[%s3153_s24 + $0x48] sm:$0xff]  ;;  %s3091_s10 = smov 112  }
  0x13   : > { %v3166_v12 = vcombine.low %v3156_v9, %v3159_v10  ;;  %v3169_v13 = vld [vmem:[%s3153_s24 + $0x54] sm:$0xff]  ;;  %v3175_v15 = vld [vmem:[%s3153_s24 + $0x3c] sm:$0xff]  ;;  %v3197_v27 = vld [vmem:[%s3153_s24 + $0x44] sm:$0xf]  ;;  %s3092_s13 = smov 126   ;;  %s3094_s29 = smov 96  }
  0x14   : > { %v3172_v14 = vld [vmem:[%s3153_s24 + $0x30] sm:$0xff]  ;;  %v259_v16 = vrot.slane %v2738_v1, %v258_v8  ;;  %v266_v17 = vrot.slane %v252_v6, %v258_v8  ;;  %v3179_v19 = vcombine.high %v3162_v11, %v3169_v13  ;;  %v3191_v24 = vcombine.low %v3162_v11, %v3169_v13  ;;  %v3194_v25 = vld [vmem:[%s3153_s24 + $0x38] sm:$0xf]  ;;  %v3207_v34 = vld [vmem:[%s3153_s24 + $0x24] sm:$0xff]  ;;  %s3095_s30 = smov 95   ;;  %s2959_s12 = sshll.u32 %s4220_s15, 7 }
  0x15   : > { %568 = vrot.lane.b32.xlu0 %v3166_v12, %s3084_s25  ;;  %v3185_v20 = vcombine.high %v3172_v14, %v3175_v15  ;;  %v3204_v33 = vld [vmem:[%s3153_s24 + $0x18] sm:$0xff]  ;;  %v3213_v35 = vcombine.low %v3194_v25, %v3197_v27  ;;  %v3225_v40 = vcombine.low %v3172_v14, %v3175_v15  ;;  %v3239_v49 = vld [vmem:[%s3153_s24] sm:$0xff]  ;;  %v3242_v50 = vld [vmem:[%s3153_s24 + $0xc] sm:$0xff]  ;;  %s4069_s14 = scalar_lea.vmem %s4158_s4, %s2959_s12 }
  0x16   : > { %v268_v21 = vpack.i.b16 %v259_v16, %v259_v16  ;;  %v275_v22 = vpack.i.b16 %v266_v17, %v266_v17  ;;  %v720_v23 = vshrl.u32 %v259_v16, 16  ;;  %566 = vrot.lane.b32.xlu1 %v3179_v19, %s3084_s25  ;;  %v727_v26 = vshrl.u32 %v266_v17, 16  ;;  %v3245_v52 = vld [vmem:[%s3153_s24 + $0x20] sm:$0xf]  ;;  %v3248_v53 = vld [vmem:[%s3153_s24 + $0x2c] sm:$0xf] }
  0x17   : > { %v3236_v48 = vcombine.high %v3204_v33, %v3207_v34  ;;  %v3260_v59 = vcombine.low %v3245_v52, %v3248_v53  ;;  %v3263_v60 = vld [vmem:[%s3153_s24 + $0x8] sm:$0xf]  ;;  %v3266_v61 = vld [vmem:[%s3153_s24 + $0x14] sm:$0xf]  ;;  %v3270_v63 = vcombine.low %v3204_v33, %v3207_v34  ;;  %v3286_v3 = vcombine.high %v3239_v49, %v3242_v50 }
  0x18   : > { %v273_v28 = vrot.slane %v268_v21, %v272_v18  ;;  %v280_v29 = vrot.slane %v275_v22, %v272_v18  ;;  %v721_v30 = vpack.i.b16 %v720_v23, %v720_v23  ;;  %v728_v31 = vpack.i.b16 %v727_v26, %v727_v26  ;;  %v3023_v22 = vld [vmem:[%s4155_s1 + $0x18] sm:$0xff]  }
  0x19   : > { %560 = vrot.lane.b32.xlu0 %v3185_v20, %s3084_s25  ;;  %v3278_v1 = vcombine.low %v3263_v60, %v3266_v61  ;;  %v3296_v4 = vcombine.low %v3239_v49, %v3242_v50 }
  0x1a   : > { %v3201_v32 = vcombine.low %v273_v28, %v280_v29  ;;  %564 = vrot.lane.b32.xlu1 %v3191_v24, %s3084_s25  ;;  %v726_v41 = vrot.slane %v721_v30, %v272_v18  ;;  %v733_v42 = vrot.slane %v728_v31, %v272_v18 }
  0x1c   : > { %v293_v36 = vmul.bf16 %v3201_v32, %v3162_v11  ;;  %v294_v37 = vmul.bf16 %v3201_v32, %v3169_v13  ;;  %v291_v38 = vmul.bf16 %v3201_v32, %v3172_v14  ;;  %v292_v39 = vmul.bf16 %v3201_v32, %v3175_v15 }
  0x1d   : > { %v289_v43 = vmul.bf16 %v3201_v32, %v3204_v33  ;;  %1017 = vrot.lane.b32.xlu0 %v3201_v32, %s3085_s26  ;;  %v290_v47 = vmul.bf16 %v3201_v32, %v3207_v34  ;;  %v2784_v51 = vcombine.low %v726_v41, %v733_v42  ;;  %v287_v56 = vmul.bf16 %v3201_v32, %v3239_v49  ;;  %s3093_s26 = smov 110  }
  0x1e   : > { %v2751_v44 = vcombine.high %v293_v36, %v294_v37  ;;  %v2750_v45 = vcombine.low %v293_v36, %v294_v37  ;;  %v2749_v46 = vcombine.high %v291_v38, %v292_v39  ;;  %562 = vrot.lane.b32.xlu1 %v3213_v35, %s3084_s25  ;;  %v2748_v54 = vcombine.low %v291_v38, %v292_v39 }
  0x1f   : > { %v2747_v55 = vcombine.high %v289_v43, %v290_v47  ;;  %v288_v57 = vmul.bf16 %v3201_v32, %v3242_v50  ;;  %v2746_v58 = vcombine.low %v289_v43, %v290_v47 }
  0x20   : > { %2960 = vmatprep.subr.bf16.mxu1 %v2751_v44  ;;  %384 = vmatprep.subr.bf16.mxu0 %v2751_v44 }
  0x21   : > { %2964 = vmatpush1.bf16.msra.mxu1 %v2750_v45  ;;  %385 = vmatpush1.bf16.msra.mxu0 %v2750_v45  ;;  %v2745_v62 = vcombine.high %v287_v56, %v288_v57  ;;  %v2744_v0 = vcombine.low %v287_v56, %v288_v57 }
  0x22   : > { %558 = vrot.lane.b32.xlu0 %v3225_v40, %s3084_s25  ;;  %2961 = vmatprep.subr.bf16.mxu1 %v2749_v46 }
  0x23   : > { %554 = vrot.lane.b32.xlu1 %v3236_v48, %s3084_s25  ;;  %386 = vmatprep.subr.bf16.mxu0 %v2749_v46 }
  0x25   : > { %2965 = vmatpush1.bf16.msra.mxu1 %v2748_v54  ;;  %387 = vmatpush1.bf16.msra.mxu0 %v2748_v54 }
  0x26   : > { %739 = vrot.lane.b32.xlu0 %v2784_v51, %s3086_s27  ;;  %2962 = vmatprep.subr.bf16.mxu1 %v2747_v55 }
  0x27   : > { %1498 = vrot.lane.b32.xlu1 %v2784_v51, %s3087_s28  ;;  %388 = vmatprep.subr.bf16.mxu0 %v2747_v55 }
  0x29   : > { %2966 = vmatpush1.bf16.msra.mxu1 %v2746_v58  ;;  %389 = vmatpush1.bf16.msra.mxu0 %v2746_v58 }
  0x2a   : > { %556 = vrot.lane.b32.xlu0 %v3260_v59, %s3084_s25  ;;  %2963 = vmatprep.subr.bf16.mxu1 %v2745_v62 }
  0x2b   : > { %552 = vrot.lane.b32.xlu1 %v3270_v63, %s3084_s25  ;;  %390 = vmatprep.subr.bf16.mxu0 %v2745_v62 }
  0x2d   : > { %2967 = vmatpush1.bf16.msra.mxu1 %v2744_v0  ;;  %391 = vmatpush1.bf16.msra.mxu0 %v2744_v0 }
  0x2e   : > { %1776 = vrot.lane.b32.xlu0 %v3201_v32, %s3088_s5  ;;  %s3096_s5 = smov 94  }
  0x2f   : > { %550 = vrot.lane.b32.xlu1 %v3278_v1, %s3084_s25 }
  0x30   : > { %2754 = vmatmul.mubr.msk.bf16.vlgmr.msra.gmra.mxu1 %vm363_vm0, %v3022_v2 }
  0x31   : > { %438 = vmatprep.mubr.bf16.mxu1 %v3083_v5 }
  0x32   : > { %548 = vrot.lane.b32.xlu0 %v3286_v3, %s3084_s25 }
  0x33   : > { %2257 = vrot.lane.b32.xlu1 %v2784_v51, %s3089_s6 }
  0x36   : > { %546 = vrot.lane.b32.xlu0 %v3296_v4, %s3084_s25 }
  0x37   : > { %1346 = vrot.lane.b32.xlu1 %v3166_v12, %s3090_s7 }
  0x38   : > { %2755 = vmatmul.mubr.msk.bf16.gmra.mxu1 %vm363_vm0, %v3023_v22 }
  0x39   : > { %631 = vmatprep.mubr.bf16.mxu1 %v3083_v5 }
  0x3a   : > { %1344 = vrot.lane.b32.xlu0 %v3179_v19, %s3090_s7 }
  0x3b   : > { %1340 = vrot.lane.b32.xlu1 %v3213_v35, %s3090_s7 }
  0x3e   : > { %1342 = vrot.lane.b32.xlu0 %v3191_v24, %s3090_s7 }
  0x3f   : > { %1332 = vrot.lane.b32.xlu1 %v3236_v48, %s3090_s7 }
  0x42   : > { %1338 = vrot.lane.b32.xlu0 %v3185_v20, %s3090_s7 }
  0x43   : > { %1330 = vrot.lane.b32.xlu1 %v3270_v63, %s3090_s7 }
  0x46   : > { %1336 = vrot.lane.b32.xlu0 %v3225_v40, %s3090_s7 }
  0x47   : > { %1328 = vrot.lane.b32.xlu1 %v3278_v1, %s3090_s7 }
  0x4a   : > { %1334 = vrot.lane.b32.xlu0 %v3260_v59, %s3090_s7 }
  0x4e   : > { %1326 = vrot.lane.b32.xlu0 %v3286_v3, %s3090_s7 }
  0x87   : > { %v569_v6 = vpop.permute.xlu0 %568 }
  0x88   : > { %v567_v7 = vpop.permute.xlu1 %566 }
  0x89   : > { %v578_v8 = vsel %vm570_vm1, %v567_v7, %v569_v6 }
  0x8a   : > { %607 = vmatprep.subr.bf16.mxu1 %v578_v8 }
  0x8b   : > { %v561_v16 = vpop.permute.xlu0 %560 }
  0x8c   : > { %v565_v17 = vpop.permute.xlu1 %564 }
  0x8d   : > { %v577_v18 = vsel %vm570_vm1, %v565_v17, %v567_v7 }
  0x8e   : > { %608 = vmatpush1.bf16.msra.mxu1 %v577_v18 }
  0x8f   : > { %v1018_v21 = vpop.permute.xlu0 %1017 }
  0x90   : > { %v563_v23 = vpop.permute.xlu1 %562  ;;  %v1019_v26 = vrot.slane %v1018_v21, 4 }
  0x91   : > { %v576_v28 = vsel %vm570_vm1, %v561_v16, %v563_v23 }
  0x92   : > { %609 = vmatprep.subr.bf16.mxu1 %v576_v28  ;;  %v1037_v29 = vmul.bf16 %v1019_v26, %v3156_v9  ;;  %v1039_v30 = vmul.bf16 %v1019_v26, %v3159_v10  ;;  %v1033_v31 = vmul.bf16 %v1019_v26, %v3194_v25  ;;  %v1035_v36 = vmul.bf16 %v1019_v26, %v3197_v27 }
  0x93   : > { %v1029_v39 = vmul.bf16 %v1019_v26, %v3245_v52  ;;  %v1031_v41 = vmul.bf16 %v1019_v26, %v3248_v53  ;;  %v1021_v43 = vsel %vm1020_vm2, %v1019_v26, %v1018_v21  ;;  %v1025_v45 = vmul.bf16 %v1019_v26, %v3263_v60 }
  0x94   : > { %v559_v32 = vpop.permute.xlu0 %558  ;;  %v2836_v38 = vcombine.low %v1037_v29, %v1039_v30  ;;  %v2833_v44 = vcombine.low %v1033_v31, %v1035_v36  ;;  %v1027_v46 = vmul.bf16 %v1019_v26, %v3266_v61  ;;  %v1032_v54 = vmul.bf16 %v1021_v43, %v3172_v14 }
  0x95   : > { %v575_v37 = vsel %vm570_vm1, %v559_v32, %v561_v16  ;;  %v555_v42 = vpop.permute.xlu1 %554  ;;  %v2830_v51 = vcombine.low %v1029_v39, %v1031_v41  ;;  %v1034_v55 = vmul.bf16 %v1021_v43, %v3175_v15  ;;  %v1036_v58 = vmul.bf16 %v1021_v43, %v3162_v11 }
  0x96   : > { %610 = vmatpush1.bf16.msra.mxu1 %v575_v37  ;;  %1143 = vrot.lane.b32.xlu1 %v2836_v38, %s3091_s10  ;;  %v2827_v57 = vcombine.low %v1025_v45, %v1027_v46  ;;  %v1038_v62 = vmul.bf16 %v1021_v43, %v3169_v13  ;;  %v1024_v21 = vmul.bf16 %v1021_v43, %v3239_v49 }
  0x97   : > { %1137 = vrot.lane.b32.xlu0 %v2833_v44, %s3091_s10  ;;  %v2832_v2 = vcombine.high %v1032_v54, %v1034_v55  ;;  %v2831_v18 = vcombine.low %v1032_v54, %v1034_v55  ;;  %v1026_v22 = vmul.bf16 %v1021_v43, %v3242_v50  ;;  %v1028_v28 = vmul.bf16 %v1021_v43, %v3204_v33  ;;  %v3026_v54 = vld [vmem:[%s4155_s1] sm:$0xff]  }
  0x98   : > { %v740_v47 = vpop.permute.xlu0 %739  ;;  %v2835_v7 = vcombine.high %v1036_v58, %v1038_v62  ;;  %v2834_v26 = vcombine.low %v1036_v58, %v1038_v62  ;;  %v1030_v29 = vmul.bf16 %v1021_v43, %v3207_v34  ;;  %2752 = vmatmul.mubr.msk.bf16.vlgmr.msra.gmra.mxu0 %vm363_vm0, %v3026_v54 }
  0x99   : > { %v3343_v56 = vpop.permute.xlu1 %1498  ;;  %v741_v31 = vrot.slane %v740_v47, 4  ;;  %v2826_v32 = vcombine.high %v1024_v21, %v1026_v22  ;;  %v2825_v44 = vcombine.low %v1024_v21, %v1026_v22  ;;  %418 = vmatprep.mubr.bf16.mxu0 %v3083_v5 }
  0x9a   : > { %1131 = vrot.lane.b32.xlu1 %v2830_v51, %s3091_s10  ;;  %v2829_v37 = vcombine.high %v1028_v28, %v1030_v29  ;;  %v2828_v51 = vcombine.low %v1028_v28, %v1030_v29 }
  0x9b   : > { %1125 = vrot.lane.b32.xlu0 %v2827_v57, %s3091_s10  ;;  %v751_v38 = vmul.bf16 %v741_v31, %v3245_v52  ;;  %v753_v39 = vmul.bf16 %v741_v31, %v3248_v53  ;;  %v759_v41 = vmul.bf16 %v741_v31, %v3156_v9  ;;  %v743_v46 = vsel %vm742_vm3, %v741_v31, %v740_v47 }
  0x9c   : > { %v557_v0 = vpop.permute.xlu0 %556  ;;  %v758_v62 = vmul.bf16 %v743_v46, %v3162_v11  ;;  %v755_v47 = vmul.bf16 %v741_v31, %v3194_v25  ;;  %v747_v29 = vmul.bf16 %v741_v31, %v3263_v60 }
  0x9d   : > { %v553_v6 = vpop.permute.xlu1 %552  ;;  %v574_v16 = vsel %vm570_vm1, %v555_v42, %v557_v0  ;;  %v2802_v55 = vcombine.low %v751_v38, %v753_v39  ;;  %v760_v0 = vmul.bf16 %v743_v46, %v3169_v13  ;;  %v756_v38 = vmul.bf16 %v743_v46, %v3175_v15 }
  0x9e   : > { %1135 = vrot.lane.b32.xlu1 %v2832_v2, %s3091_s10  ;;  %v573_v8 = vsel %vm570_vm1, %v553_v6, %v555_v42  ;;  %611 = vmatprep.subr.bf16.mxu1 %v574_v16  ;;  %v761_v42 = vmul.bf16 %v741_v31, %v3159_v10  ;;  %v757_v6 = vmul.bf16 %v741_v31, %v3197_v27 }
  0x9f   : > { %1141 = vrot.lane.b32.xlu0 %v2835_v7, %s3091_s10  ;;  %612 = vmatpush1.bf16.msra.mxu1 %v573_v8 }
  0xa0   : > { %v3353_v17 = vpop.permute.xlu0 %1776  ;;  %v2808_v57 = vcombine.low %v759_v41, %v761_v42  ;;  %v2805_v28 = vcombine.low %v755_v47, %v757_v6  ;;  %v3028_v41 = vld [vmem:[%s4155_s1 + $0x8] sm:$0xff]   ;;  %v3425_v6 = vrot.slane %v3343_v56, 4 }
  0xa1   : > { %v551_v23 = vpop.permute.xlu1 %550  ;;  %2753 = vmatmul.mubr.msk.bf16.gmra.mxu0 %vm363_vm0, %v3028_v41 }
  0xa2   : > { %1133 = vrot.lane.b32.xlu1 %v2831_v18, %s3091_s10  ;;  %v2807_v18 = vcombine.high %v758_v62, %v760_v0  ;;  %928 = vmatprep.mubr.bf16.mxu0 %v3083_v5  ;;  %v1512_v41 = vmul.bf16 %v3425_v6, %v3248_v53 }
  0xa3   : > { %1139 = vrot.lane.b32.xlu0 %v2834_v26, %s3091_s10  ;;  %v3024_v26 = vld [vmem:[%s4155_s1 + $0x20] sm:$0xff]  }
  0xa4   : > { %v549_v30 = vpop.permute.xlu0 %548 }
  0xa5   : > { %v3361_v36 = vpop.permute.xlu1 %2257  ;;  %v572_v8 = vsel %vm570_vm1, %v549_v30, %v551_v23 }
  0xa6   : > { %1123 = vrot.lane.b32.xlu1 %v2826_v32, %s3091_s10  ;;  %613 = vmatprep.subr.bf16.mxu1 %v572_v8  ;;  %v749_v32 = vmul.bf16 %v741_v31, %v3266_v61  ;;  %v750_v31 = vmul.bf16 %v743_v46, %v3204_v33 }
  0xa7   : > { %1129 = vrot.lane.b32.xlu0 %v2829_v37, %s3091_s10  ;;  %v754_v37 = vmul.bf16 %v743_v46, %v3172_v14 }
  0xa8   : > { %v547_v43 = vpop.permute.xlu0 %546  ;;  %v2799_v42 = vcombine.low %v747_v29, %v749_v32  ;;  %v3027_v32 = vld [vmem:[%s4155_s1 + $0x30] sm:$0xff]  }
  0xa9   : > { %v1347_v45 = vpop.permute.xlu1 %1346  ;;  %v571_v7 = vsel %vm570_vm1, %v547_v43, %v549_v30  ;;  %v2806_v30 = vcombine.low %v758_v62, %v760_v0  ;;  %v752_v43 = vmul.bf16 %v743_v46, %v3207_v34  ;;  %v2804_v54 = vcombine.high %v754_v37, %v756_v38 }
  0xaa   : > { %1121 = vrot.lane.b32.xlu1 %v2825_v44, %s3091_s10  ;;  %614 = vmatpush1.bf16.msra.mxu1 %v571_v7  ;;  %v2803_v8 = vcombine.low %v754_v37, %v756_v38  ;;  %v1516_v37 = vmul.bf16 %v3425_v6, %v3197_v27 }
  0xab   : > { %1127 = vrot.lane.b32.xlu0 %v2828_v51, %s3091_s10  ;;  %v2801_v62 = vcombine.high %v750_v31, %v752_v43 }
  0xac   : > { %v1345_v58 = vpop.permute.xlu0 %1344 }
  0xad   : > { %v1341_v2 = vpop.permute.xlu1 %1340  ;;  %2780 = vmatmul.mubr.msk.bf16.vlgmr.msra.gmra.mxu1 %vm363_vm0, %v3024_v26  ;;  %v3416_v0 = vsel %vm1348_vm4, %v1345_v58, %v1347_v45 }
  0xae   : > { %853 = vrot.lane.b32.xlu1 %v2802_v55, %s3092_s13  ;;  %641 = vmatprep.mubr.bf16.mxu1 %v3083_v5 }
  0xaf   : > { %865 = vrot.lane.b32.xlu0 %v2808_v57, %s3092_s13  ;;  %v3025_v57 = vld [vmem:[%s4155_s1 + $0x28] sm:$0xff]  }
  0xb0   : > { %v1343_v16 = vpop.permute.xlu0 %1342 }
  0xb1   : > { %v3385_v21 = vsel %vm1348_vm4, %v1343_v16, %v1345_v58  ;;  %v1333_v22 = vpop.permute.xlu1 %1332  ;;  %v746_v16 = vmul.bf16 %v743_v46, %v3239_v49  ;;  %v2800_v58 = vcombine.low %v750_v31, %v752_v43 }
  0xb2   : > { %863 = vrot.lane.b32.xlu1 %v2807_v18, %s3092_s13  ;;  %v748_v18 = vmul.bf16 %v743_v46, %v3242_v50 }
  0xb3   : > { %859 = vrot.lane.b32.xlu0 %v2805_v28, %s3092_s13  ;;  %v1520_v28 = vmul.bf16 %v3425_v6, %v3159_v10 }
  0xb4   : > { %v1339_v23 = vpop.permute.xlu0 %1338  ;;  %v2798_v29 = vcombine.high %v746_v16, %v748_v18  ;;  %v2797_v31 = vcombine.low %v746_v16, %v748_v18 }
  0xb5   : > { %v1331_v39 = vpop.permute.xlu1 %1330  ;;  %v3421_v47 = vsel %vm1348_vm4, %v1339_v23, %v1341_v2  ;;  %2781 = vmatmul.mubr.msk.bf16.gmra.mxu1 %vm363_vm0, %v3025_v57  ;;  %v1518_v2 = vmul.bf16 %v3425_v6, %v3156_v9 }
  0xb6   : > { %v3403_v44 = vsel %vm1348_vm4, %v1331_v39, %v1333_v22  ;;  %861 = vrot.lane.b32.xlu1 %v2806_v30, %s3092_s13  ;;  %651 = vmatprep.mubr.bf16.mxu1 %v3083_v5  ;;  %v1514_v30 = vmul.bf16 %v3425_v6, %v3194_v25  ;;  %v1510_v39 = vmul.bf16 %v3425_v6, %v3245_v52 }
  0xb7   : > { %847 = vrot.lane.b32.xlu0 %v2799_v42, %s3092_s13  ;;  %v2880_v38 = vcombine.low %v1518_v2, %v1520_v28 }
  0xb8   : > { %v1337_v51 = vpop.permute.xlu0 %1336  ;;  %v2877_v43 = vcombine.low %v1514_v30, %v1516_v37  ;;  %v2874_v57 = vcombine.low %v1510_v39, %v1512_v41  ;;  %v1506_v30 = vmul.bf16 %v3425_v6, %v3263_v60  ;;  %v1508_v37 = vmul.bf16 %v3425_v6, %v3266_v61 }
  0xb9   : > { %v3409_v55 = vsel %vm1348_vm4, %v1337_v51, %v1339_v23  ;;  %v1329_v26 = vpop.permute.xlu1 %1328 }
  0xba   : > { %857 = vrot.lane.b32.xlu1 %v2804_v54, %s3092_s13 }
  0xbb   : > { %851 = vrot.lane.b32.xlu0 %v2801_v62, %s3092_s13 }
  0xbc   : > { %v1335_v7 = vpop.permute.xlu0 %1334 }
  0xbd   : > { %v3431_v45 = vsel %vm1348_vm4, %v1333_v22, %v1335_v7  ;;  %v3443_v22 = vrot.slane %v3353_v17, 4  ;;  %2782 = vmatmul.mubr.msk.bf16.gmra.mxu1 %vm363_vm0, %v3027_v32  ;;  %v3029_v7 = vld [vmem:[%s4155_s1 + $0x38] sm:$0xff]  }
  0xbe   : > { %855 = vrot.lane.b32.xlu1 %v2803_v8, %s3092_s13  ;;  %661 = vmatprep.mubr.bf16.mxu1 %v3083_v5 }
  0xbf   : > { %849 = vrot.lane.b32.xlu0 %v2800_v58, %s3092_s13  ;;  %v3465_v42 = vsel %vm1779_vm5, %v3443_v22, %v3353_v17  ;;  %v1796_v51 = vmul.bf16 %v3443_v22, %v3156_v9  ;;  %v1798_v54 = vmul.bf16 %v3443_v22, %v3159_v10  ;;  %v1792_v18 = vmul.bf16 %v3443_v22, %v3194_v25 }
  0xc0   : > { %v3440_v46 = vpop.permute.xlu0 %1326  ;;  %v1795_v17 = vmul.bf16 %v3465_v42, %v3162_v11  ;;  %v1797_v62 = vmul.bf16 %v3465_v42, %v3169_v13  ;;  %v1794_v58 = vmul.bf16 %v3443_v22, %v3197_v27  ;;  %v1791_v39 = vmul.bf16 %v3465_v42, %v3172_v14 }
  0xc1   : > { %v3450_v23 = vsel %vm1348_vm4, %v3440_v46, %v1329_v26  ;;  %v2908_v8 = vcombine.low %v1796_v51, %v1798_v54  ;;  %v1502_v26 = vsel %vm1501_vm6, %v3425_v6, %v3343_v56  ;;  %v1793_v41 = vmul.bf16 %v3465_v42, %v3175_v15 }
  0xc2   : > { %845 = vrot.lane.b32.xlu1 %v2798_v29, %s3092_s13  ;;  %v2907_v16 = vcombine.high %v1795_v17, %v1797_v62  ;;  %v2905_v2 = vcombine.low %v1792_v18, %v1794_v58  ;;  %v1517_v28 = vmul.bf16 %v1502_v26, %v3162_v11  ;;  %v1519_v29 = vmul.bf16 %v1502_v26, %v3169_v13 }
  0xc3   : > { %1324 = vrot.lane.b32.xlu0 %v3296_v4, %s3090_s7  ;;  %v2906_v32 = vcombine.low %v1795_v17, %v1797_v62  ;;  %v1511_v6 = vmul.bf16 %v1502_v26, %v3207_v34  ;;  %v2904_v51 = vcombine.high %v1791_v39, %v1793_v41  ;;  %v1513_v54 = vmul.bf16 %v1502_v26, %v3172_v14 }
  0xc4   : > { %v2879_v56 = vcombine.high %v1517_v28, %v1519_v29 }
  0xc5   : > { %2783 = vmatmul.mubr.msk.bf16.gmra.mxu1 %vm363_vm0, %v3029_v7 }
  0xc6   : > { %843 = vrot.lane.b32.xlu1 %v2797_v31, %s3092_s13  ;;  %1206 = vmatprep.mubr.bf16.mxu1 %v3083_v5  ;;  %v2878_v31 = vcombine.low %v1517_v28, %v1519_v29  ;;  %v1788_v28 = vmul.bf16 %v3443_v22, %v3245_v52  ;;  %v1790_v29 = vmul.bf16 %v3443_v22, %v3248_v53 }
  0xc7   : > { %1624 = vrot.lane.b32.xlu0 %v2880_v38, %s3093_s26  ;;  %v2871_v38 = vcombine.low %v1506_v30, %v1508_v37  ;;  %v1789_v30 = vmul.bf16 %v3465_v42, %v3207_v34 }
  0xc8   : > { %v2902_v37 = vcombine.low %v1788_v28, %v1790_v29 }
  0xca   : > { %1618 = vrot.lane.b32.xlu1 %v2877_v43, %s3093_s26  ;;  %v1509_v43 = vmul.bf16 %v1502_v26, %v3204_v33 }
  0xcb   : > { %1612 = vrot.lane.b32.xlu0 %v2874_v57, %s3093_s26  ;;  %v1515_v57 = vmul.bf16 %v1502_v26, %v3175_v15 }
  0xcc   : > { %v2873_v17 = vcombine.high %v1509_v43, %v1511_v6  ;;  %v2872_v7 = vcombine.low %v1509_v43, %v1511_v6  ;;  %v1784_v43 = vmul.bf16 %v3443_v22, %v3263_v60  ;;  %v1786_v6 = vmul.bf16 %v3443_v22, %v3266_v61 }
  0xcd   : > { %v2876_v62 = vcombine.high %v1513_v54, %v1515_v57  ;;  %v2875_v18 = vcombine.low %v1513_v54, %v1515_v57  ;;  %v3548_v54 = vrot.slane %v3361_v36, 4 }
  0xce   : > { %1902 = vrot.lane.b32.xlu1 %v2908_v8, %s3094_s29  ;;  %v1505_v8 = vmul.bf16 %v1502_v26, %v3239_v49 }
  0xcf   : > { %1900 = vrot.lane.b32.xlu0 %v2907_v16, %s3094_s29  ;;  %v1507_v16 = vmul.bf16 %v1502_v26, %v3242_v50  ;;  %v1787_v26 = vmul.bf16 %v3465_v42, %v3204_v33  ;;  %v2261_v22 = vsel %vm2260_vm7, %v3548_v54, %v3361_v36 }
  0xd0   : > { %v2278_v57 = vmul.bf16 %v2261_v22, %v3169_v13  ;;  %v2272_v36 = vmul.bf16 %v2261_v22, %v3172_v14 }
  0xd1   : > { %v2870_v58 = vcombine.high %v1505_v8, %v1507_v16 }
  0xd2   : > { %1896 = vrot.lane.b32.xlu1 %v2905_v2, %s3094_s29  ;;  %v2903_v2 = vcombine.low %v1791_v39, %v1793_v41  ;;  %v2901_v39 = vcombine.high %v1787_v26, %v1789_v30 }
  0xd3   : > { %1898 = vrot.lane.b32.xlu0 %v2906_v32, %s3094_s29  ;;  %v2869_v32 = vcombine.low %v1505_v8, %v1507_v16  ;;  %v2269_v16 = vmul.bf16 %v3548_v54, %v3245_v52  ;;  %v2270_v52 = vmul.bf16 %v2261_v22, %v3207_v34 }
  0xd6   : > { %1622 = vrot.lane.b32.xlu1 %v2879_v56, %s3093_s26  ;;  %v1783_v56 = vmul.bf16 %v3465_v42, %v3239_v49 }
  0xd7   : > { %1606 = vrot.lane.b32.xlu0 %v2871_v38, %s3093_s26  ;;  %v1785_v38 = vmul.bf16 %v3465_v42, %v3242_v50  ;;  %v2899_v42 = vcombine.low %v1784_v43, %v1786_v6 }
  0xd9   : > { %v2898_v41 = vcombine.high %v1783_v56, %v1785_v38 }
  0xda   : > { %1620 = vrot.lane.b32.xlu1 %v2878_v31, %s3093_s26  ;;  %v2900_v31 = vcombine.low %v1787_v26, %v1789_v30 }
  0xdb   : > { %1894 = vrot.lane.b32.xlu0 %v2904_v51, %s3094_s29  ;;  %v2897_v51 = vcombine.low %v1783_v56, %v1785_v38 }
  0xde   : > { %1610 = vrot.lane.b32.xlu1 %v2873_v17, %s3093_s26  ;;  %v2274_v17 = vmul.bf16 %v2261_v22, %v3175_v15  ;;  %v2273_v15 = vmul.bf16 %v3548_v54, %v3194_v25 }
  0xdf   : > { %1616 = vrot.lane.b32.xlu0 %v2876_v62, %s3093_s26 }
  0xe0   : > { %v2948_v62 = vcombine.high %v2272_v36, %v2274_v17  ;;  %v2947_v8 = vcombine.low %v2272_v36, %v2274_v17 }
  0xe2   : > { %1608 = vrot.lane.b32.xlu1 %v2872_v7, %s3093_s26  ;;  %v2275_v7 = vmul.bf16 %v3548_v54, %v3197_v27 }
  0xe3   : > { %1614 = vrot.lane.b32.xlu0 %v2875_v18, %s3093_s26 }
  0xe6   : > { %1604 = vrot.lane.b32.xlu1 %v2870_v58, %s3093_s26  ;;  %v2949_v58 = vcombine.low %v2273_v15, %v2275_v7 }
  0xe7   : > { %1892 = vrot.lane.b32.xlu0 %v2903_v2, %s3094_s29  ;;  %v2268_v2 = vmul.bf16 %v2261_v22, %v3204_v33 }
  0xe9   : > { %v2945_v33 = vcombine.high %v2268_v2, %v2270_v52  ;;  %v2944_v38 = vcombine.low %v2268_v2, %v2270_v52  ;;  %v3031_v2 = vld [vmem:[%s4155_s1 + $0x48] sm:$0xff]  }
  0xea   : > { %1602 = vrot.lane.b32.xlu1 %v2869_v32, %s3093_s26  ;;  %v2266_v32 = vmul.bf16 %v2261_v22, %v3242_v50 }
  0xeb   : > { %1890 = vrot.lane.b32.xlu0 %v2902_v37, %s3094_s29 }
  0xee   : > { %1888 = vrot.lane.b32.xlu1 %v2901_v39, %s3094_s29  ;;  %v2265_v39 = vmul.bf16 %v3548_v54, %v3263_v60 }
  0xef   : > { %1882 = vrot.lane.b32.xlu0 %v2898_v41, %s3094_s29  ;;  %v2267_v41 = vmul.bf16 %v3548_v54, %v3266_v61 }
  0xf2   : > { %1886 = vrot.lane.b32.xlu1 %v2900_v31, %s3094_s29 }
  0xf3   : > { %1880 = vrot.lane.b32.xlu0 %v2897_v51, %s3094_s29  ;;  %v3032_v51 = vld [vmem:[%s4155_s1 + $0x60] sm:$0xff]  }
  0xf6   : > { %1884 = vrot.lane.b32.xlu1 %v2899_v42, %s3094_s29 }
  0xf7   : > { %2105 = vrot.lane.b32.xlu0 %v3166_v12, %s3095_s30  ;;  %v2276_v12 = vmul.bf16 %v2261_v22, %v3162_v11  ;;  %v2279_v11 = vmul.bf16 %v3548_v54, %v3159_v10 }
  0xfa   : > { %2103 = vrot.lane.b32.xlu1 %v3179_v19, %s3095_s30  ;;  %v2951_v19 = vcombine.high %v2276_v12, %v2278_v57 }
  0xfb   : > { %2097 = vrot.lane.b32.xlu0 %v3185_v20, %s3095_s30 }
  0xfe   : > { %2101 = vrot.lane.b32.xlu1 %v3191_v24, %s3095_s30  ;;  %v2277_v24 = vmul.bf16 %v3548_v54, %v3156_v9 }
  0xff   : > { %2095 = vrot.lane.b32.xlu0 %v3225_v40, %s3095_s30  ;;  %v2950_v40 = vcombine.low %v2276_v12, %v2278_v57 }
 0x102   : > { %2099 = vrot.lane.b32.xlu1 %v3213_v35, %s3095_s30 }
 0x103   : > { %2093 = vrot.lane.b32.xlu0 %v3260_v59, %s3095_s30  ;;  %v2952_v59 = vcombine.low %v2277_v24, %v2279_v11 }
 0x106   : > { %2091 = vrot.lane.b32.xlu1 %v3236_v48, %s3095_s30 }
 0x107   : > { %2381 = vrot.lane.b32.xlu0 %v2951_v19, %s3096_s5  ;;  %v3034_v19 = vld [vmem:[%s4155_s1 + $0x68] sm:$0xff]  }
 0x108   : > { %v1144_v20 = vpop.permute.xlu1 %1143 }
 0x109   : > { %v1138_v13 = vpop.permute.xlu0 %1137 }
 0x10a   : > { %2089 = vrot.lane.b32.xlu1 %v3270_v63, %s3095_s30 }
 0x10b   : > { %2379 = vrot.lane.b32.xlu0 %v2950_v40, %s3096_s5 }
 0x10c   : > { %v1132_v35 = vpop.permute.xlu1 %1131 }
 0x10d   : > { %v1126_v48 = vpop.permute.xlu0 %1125 }
 0x10e   : > { %2383 = vrot.lane.b32.xlu1 %v2952_v59, %s3096_s5 }
 0x10f   : > { %2087 = vrot.lane.b32.xlu0 %v3278_v1, %s3095_s30 }
 0x110   : > { %v1136_v9 = vpop.permute.xlu1 %1135 }
 0x111   : > { %v1142_v10 = vpop.permute.xlu0 %1141  ;;  %v1151_v25 = vsel %vm1145_vm8, %v1136_v9, %v1138_v13 }
 0x112   : > { %2085 = vrot.lane.b32.xlu1 %v3286_v3, %s3095_s30  ;;  %v1153_v63 = vsel %vm1145_vm8, %v1142_v10, %v1144_v20  ;;  %v2271_v3 = vmul.bf16 %v3548_v54, %v3248_v53  ;;  %v2264_v53 = vmul.bf16 %v2261_v22, %v3239_v49  ;;  %v2943_v22 = vcombine.low %v2265_v39, %v2267_v41 }
 0x113   : > { %2375 = vrot.lane.b32.xlu0 %v2948_v62, %s3096_s5  ;;  %1182 = vmatprep.subr.bf16.mxu1 %v1153_v63  ;;  %v2551_v62 = vld [vmem:[%s4156_s2] sm:$0xff]  ;;  %v2552_v63 = vld [vmem:[%s4156_s2 + $0x8] sm:$0xff] }
 0x114   : > { %v1134_v14 = vpop.permute.xlu1 %1133  ;;  %v2946_v29 = vcombine.low %v2269_v16, %v2271_v3  ;;  %v2942_v34 = vcombine.high %v2264_v53, %v2266_v32  ;;  %v2941_v43 = vcombine.low %v2264_v53, %v2266_v32  ;;  %v2555_v16 = vld [vmem:[%s4156_s2 + $0x20] sm:$0xff]  ;;  %v3038_v3 = vld [vmem:[%s4155_s1 + $0x78] sm:$0xff]  }
 0x115   : > { %v1140_v1 = vpop.permute.xlu0 %1139 }
 0x116   : > { %v1152_v18 = vsel %vm1145_vm8, %v1140_v1, %v1142_v10  ;;  %2083 = vrot.lane.b32.xlu1 %v3296_v4, %s3095_s30  ;;  %v1150_v4 = vsel %vm1145_vm8, %v1134_v14, %v1136_v9  ;;  %v3030_v1 = vld [vmem:[%s4155_s1 + $0x40] sm:$0xff]  }
 0x117   : > { %2373 = vrot.lane.b32.xlu0 %v2947_v8, %s3096_s5  ;;  %1183 = vmatpush1.bf16.msra.mxu1 %v1152_v18  ;;  %v2553_v8 = vld [vmem:[%s4156_s2 + $0x10] sm:$0xff] }
 0x118   : > { %1184 = vmatprep.subr.bf16.mxu1 %v1151_v25  ;;  %v1124_v27 = vpop.permute.xlu1 %1123 }
 0x119   : > { %v1130_v28 = vpop.permute.xlu0 %1129  ;;  %v1147_v49 = vsel %vm1145_vm8, %v1124_v27, %v1126_v48  ;;  %v3036_v48 = vld [vmem:[%s4155_s1 + $0x70] sm:$0xff]  }
 0x11a   : > { %2377 = vrot.lane.b32.xlu1 %v2949_v58, %s3096_s5  ;;  %v1149_v26 = vsel %vm1145_vm8, %v1130_v28, %v1132_v35 }
 0x11b   : > { %2371 = vrot.lane.b32.xlu0 %v2946_v29, %s3096_s5  ;;  %1185 = vmatpush1.bf16.msra.mxu1 %v1150_v4 }
 0x11c   : > { %1186 = vmatprep.subr.bf16.mxu1 %v1149_v26  ;;  %v1122_v30 = vpop.permute.xlu1 %1121  ;;  %v3035_v26 = vld [vmem:[%s4155_s1 + $0x58] sm:$0xff]  }
 0x11d   : > { %v1128_v37 = vpop.permute.xlu0 %1127  ;;  %v1146_v6 = vsel %vm1145_vm8, %v1122_v30, %v1124_v27  ;;  %v2554_v27 = vld [vmem:[%s4156_s2 + $0x18] sm:$0xff] }
 0x11e   : > { %v1148_v56 = vsel %vm1145_vm8, %v1128_v37, %v1130_v28  ;;  %2369 = vrot.lane.b32.xlu1 %v2945_v33, %s3096_s5  ;;  %v3692_v33 = vpop.f32.mrf.mxu1 }
 0x11f   : > { %2363 = vrot.lane.b32.xlu0 %v2942_v34, %s3096_s5  ;;  %1187 = vmatpush1.bf16.msra.mxu1 %v1148_v56 }
 0x120   : > { %1188 = vmatprep.subr.bf16.mxu1 %v1147_v49  ;;  %v854_v50 = vpop.permute.xlu1 %853 }
 0x121   : > { %v866_v31 = vpop.permute.xlu0 %865 }
 0x122   : > { %2367 = vrot.lane.b32.xlu1 %v2944_v38, %s3096_s5 }
 0x123   : > { %2361 = vrot.lane.b32.xlu0 %v2941_v43, %s3096_s5  ;;  %1189 = vmatpush1.bf16.msra.mxu1 %v1146_v6 }
 0x124   : > { %v864_v42 = vpop.permute.xlu1 %863 }
 0x125   : > { %v860_v60 = vpop.permute.xlu0 %859  ;;  %v875_v12 = vsel %vm867_vm9, %v864_v42, %v866_v31  ;;  %v3037_v31 = vld [vmem:[%s4155_s1 + $0x80] sm:$0xff]  }
 0x126   : > { %2365 = vrot.lane.b32.xlu1 %v2943_v22, %s3096_s5  ;;  %904 = vmatprep.subr.bf16.mxu0 %v875_v12 }
 0x127   : > { %2837 = vmatmul.mubr.msk.bf16.vlgmr.msra.gmra.mxu1 %vm363_vm0, %v3032_v51  ;;  %2566 = vperm.xlu0 %3009, %v2552_v63  }
 0x128   : > { %v862_v61 = vpop.permute.xlu1 %861  ;;  %1216 = vmatprep.mubr.bf16.mxu1 %v3083_v5 }
 0x129   : > { %v874_v54 = vsel %vm867_vm9, %v862_v61, %v864_v42  ;;  %v848_v57 = vpop.permute.xlu0 %847  ;;  %v3040_v61 = vld [vmem:[%s4155_s1 + $0xa0] sm:$0xff]  }
 0x12a   : > { %905 = vmatpush1.bf16.msra.mxu0 %v874_v54  ;;  %2561 = vperm.xlu1 %3008, %v2551_v62   ;;  %v3041_v62 = vld [vmem:[%s4155_s1 + $0x90] sm:$0xff]  }
 0x12b   : > { %2581 = vperm.xlu0 %3009, %v2555_v16  }
 0x12c   : > { %v858_v20 = vpop.permute.xlu1 %857 }
 0x12d   : > { %v852_v24 = vpop.permute.xlu0 %851  ;;  %v873_v11 = vsel %vm867_vm9, %v858_v20, %v860_v60 }
 0x12e   : > { %906 = vmatprep.subr.bf16.mxu0 %v873_v11  ;;  %v871_v59 = vsel %vm867_vm9, %v852_v24, %v854_v50  ;;  %2571 = vperm.xlu1 %3008, %v2553_v8   ;;  %v3698_v50 = vpop.f32.mrf.mxu1  ;;  %v3039_v11 = vld [vmem:[%s4155_s1 + $0x88] sm:$0xff]  }
 0x12f   : > { %2838 = vmatmul.mubr.msk.bf16.gmra.mxu1 %vm363_vm0, %v3034_v19 }
 0x130   : > { %v856_v13 = vpop.permute.xlu1 %855  ;;  %1226 = vmatprep.mubr.bf16.mxu1 %v3083_v5  ;;  %v3705_v6 = vpop.f32.mrf.mxu1 }
 0x131   : > { %v872_v40 = vsel %vm867_vm9, %v856_v13, %v858_v20  ;;  %v850_v35 = vpop.permute.xlu0 %849 }
 0x132   : > { %907 = vmatpush1.bf16.msra.mxu0 %v872_v40  ;;  %v870_v17 = vsel %vm867_vm9, %v850_v35, %v852_v24  ;;  %2576 = vperm.xlu1 %3008, %v2554_v27   ;;  %v3715_v54 = vpop.f32.mrf.mxu1 }
 0x133   : > { %908 = vmatprep.subr.bf16.mxu0 %v871_v59 }
 0x134   : > { %v846_v36 = vpop.permute.xlu1 %845  ;;  %v3724_v13 = vpop.f32.mrf.mxu1 }
 0x135   : > { %v1325_v9 = vpop.permute.xlu0 %1324  ;;  %v869_v10 = vsel %vm867_vm9, %v846_v36, %v848_v57 }
 0x136   : > { %909 = vmatpush1.bf16.msra.mxu0 %v870_v17  ;;  %v1349_v28 = vsel %vm1348_vm4, %v1325_v9, %v3440_v46 }
 0x137   : > { %910 = vmatprep.subr.bf16.mxu0 %v869_v10  ;;  %2839 = vmatmul.mubr.msk.bf16.gmra.mxu1 %vm363_vm0, %v3036_v48  ;;  %v3042_v48 = vld [vmem:[%s4155_s1 + $0xa8] sm:$0xff]  }
 0x138   : > { %v844_v14 = vpop.permute.xlu1 %843  ;;  %1236 = vmatprep.mubr.bf16.mxu1 %v3083_v5 }
 0x139   : > { %v868_v15 = vsel %vm867_vm9, %v844_v14, %v846_v36  ;;  %v1625_v7 = vpop.permute.xlu0 %1624  ;;  %v3732_v36 = vpop.f32.mrf.mxu1 }
 0x13a   : > { %911 = vmatpush1.bf16.msra.mxu0 %v868_v15 }
 0x13b   : > { %1385 = vmatprep.subr.bf16.mxu0 %v3416_v0  ;;  %v3741_v14 = vpop.f32.mrf.mxu1 }
 0x13c   : > { %v1619_v18 = vpop.permute.xlu1 %1618 }
 0x13d   : > { %v1613_v25 = vpop.permute.xlu0 %1612  ;;  %2809 = vmatmul.mubr.msk.bf16.vlgmr.msra.gmra.mxu0 %vm363_vm0, %v3030_v1 }
 0x13e   : > { %1386 = vmatpush1.bf16.msra.mxu0 %v3385_v21  ;;  %938 = vmatprep.mubr.bf16.mxu0 %v3083_v5 }
 0x13f   : > { %1387 = vmatprep.subr.bf16.mxu0 %v3421_v47  ;;  %2840 = vmatmul.mubr.msk.bf16.gmra.mxu1 %vm363_vm0, %v3038_v3  ;;  %v3044_v3 = vld [vmem:[%s4155_s1 + $0xb0] sm:$0xff]  }
 0x140   : > { %v1903_v0 = vpop.permute.xlu1 %1902  ;;  %1687 = vmatprep.mubr.bf16.mxu1 %v3083_v5 }
 0x141   : > { %v1901_v58 = vpop.permute.xlu0 %1900 }
 0x142   : > { %1388 = vmatpush1.bf16.msra.mxu0 %v3409_v55 }
 0x143   : > { %1389 = vmatprep.subr.bf16.mxu0 %v3431_v45  ;;  %v3033_v45 = vld [vmem:[%s4155_s1 + $0x50] sm:$0xff]  }
 0x144   : > { %v1897_v21 = vpop.permute.xlu1 %1896 }
 0x145   : > { %v1899_v52 = vpop.permute.xlu0 %1898  ;;  %2810 = vmatmul.mubr.msk.bf16.gmra.mxu0 %vm363_vm0, %v3031_v2 }
 0x146   : > { %1390 = vmatpush1.bf16.msra.mxu0 %v3403_v44  ;;  %948 = vmatprep.mubr.bf16.mxu0 %v3083_v5  ;;  %v1912_v44 = vsel %vm1904_vm11, %v1901_v58, %v1903_v0  ;;  %v1911_v42 = vsel %vm1904_vm11, %v1899_v52, %v1901_v58  ;;  %v3043_v58 = vld [vmem:[%s4155_s1 + $0x98] sm:$0xff]  }
 0x147   : > { %1391 = vmatprep.subr.bf16.mxu0 %v3450_v23 }
 0x148   : > { %v1623_v47 = vpop.permute.xlu1 %1622 }
 0x149   : > { %v1607_v29 = vpop.permute.xlu0 %1606  ;;  %v1634_v55 = vsel %vm1626_vm10, %v1623_v47, %v1625_v7 }
 0x14a   : > { %1392 = vmatpush1.bf16.msra.mxu0 %v1349_v28  ;;  %1663 = vmatprep.subr.bf16.mxu1 %v1634_v55 }
 0x14b   : > { %1941 = vmatprep.subr.bf16.mxu0 %v1912_v44 }
 0x14c   : > { %v1621_v53 = vpop.permute.xlu1 %1620 }
 0x14d   : > { %v1633_v32 = vsel %vm1626_vm10, %v1621_v53, %v1623_v47  ;;  %v1895_v23 = vpop.permute.xlu0 %1894  ;;  %2811 = vmatmul.mubr.msk.bf16.gmra.mxu0 %vm363_vm0, %v3033_v45 }
 0x14e   : > { %1664 = vmatpush1.bf16.msra.mxu1 %v1633_v32  ;;  %958 = vmatprep.mubr.bf16.mxu0 %v3083_v5  ;;  %v1910_v12 = vsel %vm1904_vm11, %v1895_v23, %v1897_v21  ;;  %v2556_v21 = vld [vmem:[%s4156_s2 + $0x28] sm:$0xff]  ;;  %v2558_v32 = vld [vmem:[%s4156_s2 + $0x38] sm:$0xff] }
 0x14f   : > { %2586 = vperm.xlu1 %3008, %v2556_v21  }
 0x150   : > { %v1611_v46 = vpop.permute.xlu1 %1610 }
 0x151   : > { %v1617_v4 = vpop.permute.xlu0 %1616  ;;  %v1630_v49 = vsel %vm1626_vm10, %v1611_v46, %v1613_v25  ;;  %v3749_v25 = vpop.f32.mrf.mxu1 }
 0x152   : > { %v1632_v30 = vsel %vm1626_vm10, %v1617_v4, %v1619_v18 }
 0x153   : > { %1665 = vmatprep.subr.bf16.mxu1 %v1632_v30  ;;  %2596 = vperm.xlu1 %3008, %v2558_v32   ;;  %v3051_v32 = vld [vmem:[%s4155_s1 + $0xe8] sm:$0xff]  }
 0x154   : > { %v1609_v37 = vpop.permute.xlu1 %1608 }
 0x155   : > { %v1615_v34 = vpop.permute.xlu0 %1614  ;;  %2812 = vmatmul.mubr.msk.bf16.gmra.mxu0 %vm363_vm0, %v3035_v26  ;;  %v1629_v43 = vsel %vm1626_vm10, %v1609_v37, %v1611_v46 }
 0x156   : > { %v1631_v56 = vsel %vm1626_vm10, %v1615_v34, %v1617_v4  ;;  %1409 = vmatprep.mubr.bf16.mxu0 %v3083_v5  ;;  %v3045_v34 = vld [vmem:[%s4155_s1 + $0xc0] sm:$0xff]  }
 0x157   : > { %1666 = vmatpush1.bf16.msra.mxu1 %v1631_v56 }
 0x158   : > { %1667 = vmatprep.subr.bf16.mxu1 %v1630_v49  ;;  %v1605_v38 = vpop.permute.xlu1 %1604  ;;  %v410_v7 = vpop.f32.mrf.mxu0 }
 0x159   : > { %v1893_v39 = vpop.permute.xlu0 %1892  ;;  %v1628_v41 = vsel %vm1626_vm10, %v1605_v38, %v1607_v29 }
 0x15a   : > { %v1909_v19 = vsel %vm1904_vm11, %v1893_v39, %v1895_v23  ;;  %v412_v16 = vpop.f32.mrf.mxu0  ;;  %v3046_v23 = vld [vmem:[%s4155_s1 + $0xb8] sm:$0xff]  }
 0x15b   : > { %1668 = vmatpush1.bf16.msra.mxu1 %v1629_v43 }
 0x15c   : > { %1669 = vmatprep.subr.bf16.mxu1 %v1628_v41  ;;  %v1603_v51 = vpop.permute.xlu1 %1602  ;;  %v414_v2 = vpop.f32.mrf.mxu0 }
 0x15d   : > { %v1627_v22 = vsel %vm1626_vm10, %v1603_v51, %v1605_v38  ;;  %v1891_v60 = vpop.permute.xlu0 %1890  ;;  %2853 = vmatmul.mubr.msk.bf16.vlgmr.msra.gmra.mxu0 %vm363_vm0, %v3037_v31 }
 0x15e   : > { %1942 = vmatpush1.bf16.msra.mxu0 %v1911_v42  ;;  %1419 = vmatprep.mubr.bf16.mxu0 %v3083_v5  ;;  %v416_v45 = vpop.f32.mrf.mxu0 }
 0x15f   : > { %1670 = vmatpush1.bf16.msra.mxu1 %v1627_v22  ;;  %1943 = vmatprep.subr.bf16.mxu0 %v1910_v12  ;;  %v2557_v12 = vld [vmem:[%s4156_s2 + $0x30] sm:$0xff] }
 0x160   : > { %v1889_v57 = vpop.permute.xlu1 %1888  ;;  %2591 = vperm.xlu0 %3009, %v2557_v12  }
 0x161   : > { %v1883_v20 = vpop.permute.xlu0 %1882  ;;  %v1908_v24 = vsel %vm1904_vm11, %v1889_v57, %v1891_v60  ;;  %v420_v49 = vpop.f32.mrf.mxu0 }
 0x162   : > { %1944 = vmatpush1.bf16.msra.mxu0 %v1909_v19  ;;  %2881 = vmatmul.mubr.msk.bf16.vlgmr.msra.gmra.mxu1 %vm363_vm0, %v3040_v61 }
 0x163   : > { %1945 = vmatprep.subr.bf16.mxu0 %v1908_v24  ;;  %1697 = vmatprep.mubr.bf16.mxu1 %v3083_v5  ;;  %v422_v41 = vpop.f32.mrf.mxu0 }
 0x164   : > { %v1887_v40 = vpop.permute.xlu1 %1886 }
 0x165   : > { %v1907_v35 = vsel %vm1904_vm11, %v1887_v40, %v1889_v57  ;;  %v1881_v59 = vpop.permute.xlu0 %1880  ;;  %2854 = vmatmul.mubr.msk.bf16.gmra.mxu0 %vm363_vm0, %v3039_v11  ;;  %v424_v57 = vpop.f32.mrf.mxu0  ;;  %v3047_v40 = vld [vmem:[%s4155_s1 + $0xc8] sm:$0xff]  }
 0x166   : > { %1946 = vmatpush1.bf16.msra.mxu0 %v1907_v35  ;;  %1429 = vmatprep.mubr.bf16.mxu0 %v3083_v5  ;;  %v1905_v63 = vsel %vm1904_vm11, %v1881_v59, %v1883_v20 }
 0x168   : > { %v1885_v17 = vpop.permute.xlu1 %1884 }
 0x169   : > { %v2106_v9 = vpop.permute.xlu0 %2105  ;;  %v1906_v10 = vsel %vm1904_vm11, %v1883_v20, %v1885_v17 }
 0x16a   : > { %1947 = vmatprep.subr.bf16.mxu0 %v1906_v10  ;;  %2882 = vmatmul.mubr.msk.bf16.gmra.mxu1 %vm363_vm0, %v3042_v48 }
 0x16b   : > { %1948 = vmatpush1.bf16.msra.mxu0 %v1905_v63  ;;  %1707 = vmatprep.mubr.bf16.mxu1 %v3083_v5 }
 0x16c   : > { %v2104_v15 = vpop.permute.xlu1 %2103 }
 0x16d   : > { %v2098_v1 = vpop.permute.xlu0 %2097  ;;  %2855 = vmatmul.mubr.msk.bf16.gmra.mxu0 %vm363_vm0, %v3041_v62  ;;  %v2115_v8 = vsel %vm2107_vm12, %v2104_v15, %v2106_v9  ;;  %v633_v47 = vpop.f32.mrf.mxu1 }
 0x16e   : > { %2144 = vmatprep.subr.bf16.mxu1 %v2115_v8  ;;  %1439 = vmatprep.mubr.bf16.mxu0 %v3083_v5  ;;  %v3762_v55 = vadd.f32 %v633_v47, %v410_v7 }
 0x16f   : > { %v635_v53 = vpop.f32.mrf.mxu1 }
 0x170   : > { %v2102_v18 = vpop.permute.xlu1 %2101  ;;  %v3772_v46 = vadd.f32 %v635_v53, %v412_v16  ;;  %v3048_v16 = vld [vmem:[%s4155_s1 + $0xd0] sm:$0xff]  }
 0x171   : > { %v2114_v27 = vsel %vm2107_vm12, %v2102_v18, %v2104_v15  ;;  %v2096_v0 = vpop.permute.xlu0 %2095  ;;  %v637_v26 = vpop.f32.mrf.mxu1 }
 0x172   : > { %2145 = vmatpush1.bf16.msra.mxu1 %v2114_v27  ;;  %v2112_v44 = vsel %vm2107_vm12, %v2096_v0, %v2098_v1  ;;  %v3778_v56 = vadd.f32 %v637_v26, %v414_v2 }
 0x173   : > { %2883 = vmatmul.mubr.msk.bf16.gmra.mxu1 %vm363_vm0, %v3044_v3  ;;  %v639_v38 = vpop.f32.mrf.mxu1  ;;  %v3049_v3 = vld [vmem:[%s4155_s1 + $0xe0] sm:$0xff]  }
 0x174   : > { %v2100_v52 = vpop.permute.xlu1 %2099  ;;  %1717 = vmatprep.mubr.bf16.mxu1 %v3083_v5  ;;  %v3781_v39 = vadd.f32 %v639_v38, %v416_v45  ;;  %v3054_v38 = vld [vmem:[%s4155_s1 + $0xf8] sm:$0xff]  }
 0x175   : > { %v2094_v28 = vpop.permute.xlu0 %2093  ;;  %2856 = vmatmul.mubr.msk.bf16.gmra.mxu0 %vm363_vm0, %v3043_v58  ;;  %v2113_v29 = vsel %vm2107_vm12, %v2098_v1, %v2100_v52  ;;  %v643_v43 = vpop.f32.mrf.mxu1 }
 0x176   : > { %2146 = vmatprep.subr.bf16.mxu1 %v2113_v29  ;;  %1965 = vmatprep.mubr.bf16.mxu0 %v3083_v5  ;;  %v3786_v22 = vadd.f32 %v643_v43, %v420_v49  ;;  %v3053_v49 = vld [vmem:[%s4155_s1 + $0x100] sm:$0xff]   ;;  %v3057_v43 = vld [vmem:[%s4155_s1 + $0x118] sm:$0xff]  }
 0x177   : > { %2147 = vmatpush1.bf16.msra.mxu1 %v2112_v44  ;;  %v645_v60 = vpop.f32.mrf.mxu1 }
 0x178   : > { %v2092_v4 = vpop.permute.xlu1 %2091  ;;  %v3792_v61 = vadd.f32 %v645_v60, %v422_v41  ;;  %v3055_v41 = vld [vmem:[%s4155_s1 + $0x108] sm:$0xff]  }
 0x179   : > { %v2382_v30 = vpop.permute.xlu0 %2381  ;;  %v2111_v37 = vsel %vm2107_vm12, %v2092_v4, %v2094_v28  ;;  %v647_v20 = vpop.f32.mrf.mxu1 }
 0x17a   : > { %2148 = vmatprep.subr.bf16.mxu1 %v2111_v37  ;;  %v3798_v35 = vadd.f32 %v647_v20, %v424_v57 }
 0x17b   : > { %2884 = vmatmul.mubr.msk.bf16.gmra.mxu1 %vm363_vm0, %v3046_v23  ;;  %v3801_v48 = vpop.f32.mrf.mxu1 }
 0x17c   : > { %v2090_v31 = vpop.permute.xlu1 %2089  ;;  %2168 = vmatprep.mubr.bf16.mxu1 %v3083_v5 }
 0x17d   : > { %v2110_v51 = vsel %vm2107_vm12, %v2090_v31, %v2092_v4  ;;  %v2380_v42 = vpop.permute.xlu0 %2379  ;;  %2909 = vmatmul.mubr.msk.bf16.vlgmr.msra.gmra.mxu0 %vm363_vm0, %v3045_v34  ;;  %v3803_v9 = vpop.f32.mrf.mxu1  ;;  %v3056_v31 = vld [vmem:[%s4155_s1 + $0x110] sm:$0xff]  }
 0x17e   : > { %2149 = vmatpush1.bf16.msra.mxu1 %v2110_v51  ;;  %1975 = vmatprep.mubr.bf16.mxu0 %v3083_v5  ;;  %v2392_v59 = vsel %vm2385_vm13, %v2380_v42, %v2382_v30 }
 0x17f   : > { %v3808_v63 = vpop.f32.mrf.mxu1 }
 0x180   : > { %v2384_v19 = vpop.permute.xlu1 %2383 }
 0x181   : > { %v2088_v24 = vpop.permute.xlu0 %2087  ;;  %v2393_v11 = vsel %vm2385_vm13, %v2382_v30, %v2384_v19  ;;  %v3810_v7 = vpop.f32.mrf.mxu1 }
 0x182   : > { %2422 = vmatprep.subr.bf16.mxu0 %v2393_v11 }
 0x183   : > { %2423 = vmatpush1.bf16.msra.mxu0 %v2392_v59  ;;  %v659_v18 = vpop.f32.mrf.mxu1 }
 0x184   : > { %v2086_v17 = vpop.permute.xlu1 %2085  ;;  %v3820_v27 = vadd.f32 %v659_v18, %v3715_v54 }
 0x185   : > { %v2376_v10 = vpop.permute.xlu0 %2375  ;;  %2910 = vmatmul.mubr.msk.bf16.gmra.mxu0 %vm363_vm0, %v3047_v40  ;;  %v2109_v62 = vsel %vm2107_vm12, %v2086_v17, %v2088_v24  ;;  %v663_v58 = vpop.f32.mrf.mxu1 }
 0x186   : > { %2150 = vmatprep.subr.bf16.mxu1 %v2109_v62  ;;  %1985 = vmatprep.mubr.bf16.mxu0 %v3083_v5  ;;  %v3826_v52 = vadd.f32 %v663_v58, %v3724_v13  ;;  %v3050_v13 = vld [vmem:[%s4155_s1 + $0xd8] sm:$0xff]  }
 0x187   : > { %v665_v28 = vpop.f32.mrf.mxu1 }
 0x188   : > { %v2084_v15 = vpop.permute.xlu1 %2083  ;;  %v3832_v54 = vadd.f32 %v665_v28, %v3732_v36 }
 0x189   : > { %v2108_v1 = vsel %vm2107_vm12, %v2084_v15, %v2086_v17  ;;  %v2374_v8 = vpop.permute.xlu0 %2373  ;;  %v667_v45 = vpop.f32.mrf.mxu1 }
 0x18a   : > { %2151 = vmatpush1.bf16.msra.mxu1 %v2108_v1  ;;  %v2390_v47 = vsel %vm2385_vm13, %v2374_v8, %v2376_v10  ;;  %v3842_v23 = vadd.f32 %v667_v45, %v3741_v14  ;;  %v3052_v14 = vld [vmem:[%s4155_s1 + $0xf0] sm:$0xff]  }
 0x18b   : > { %v669_v51 = vpop.f32.mrf.mxu1 }
 0x18c   : > { %v2378_v0 = vpop.permute.xlu1 %2377 }
 0x18d   : > { %v2372_v2 = vpop.permute.xlu0 %2371  ;;  %2911 = vmatmul.mubr.msk.bf16.gmra.mxu0 %vm363_vm0, %v3048_v16  ;;  %2925 = vmatmul.mubr.msk.bf16.vlgmr.msra.gmra.mxu1 %vm363_vm0, %v3049_v3  ;;  %v2391_v21 = vsel %vm2385_vm13, %v2376_v10, %v2378_v0 }
 0x18e   : > { %2424 = vmatprep.subr.bf16.mxu0 %v2391_v21  ;;  %1995 = vmatprep.mubr.bf16.mxu0 %v3083_v5  ;;  %v696_v21 = vadd.f32 %v3803_v9, %v3692_v33 }
 0x18f   : > { %2425 = vmatpush1.bf16.msra.mxu0 %v2390_v47  ;;  %2178 = vmatprep.mubr.bf16.mxu1 %v3083_v5 }
 0x190   : > { %v2370_v29 = vpop.permute.xlu1 %2369 }
 0x191   : > { %v2364_v44 = vpop.permute.xlu0 %2363  ;;  %v2389_v53 = vsel %vm2385_vm13, %v2370_v29, %v2372_v2 }
 0x192   : > { %2426 = vmatprep.subr.bf16.mxu0 %v2389_v53 }
 0x194   : > { %v2368_v4 = vpop.permute.xlu1 %2367 }
 0x195   : > { %v2388_v36 = vsel %vm2385_vm13, %v2368_v4, %v2370_v29  ;;  %2912 = vmatmul.mubr.msk.bf16.gmra.mxu0 %vm363_vm0, %v3050_v13  ;;  %2926 = vmatmul.mubr.msk.bf16.gmra.mxu1 %vm363_vm0, %v3051_v32  ;;  %v2362_v26 = vpop.permute.xlu0 %2361 }
 0x196   : > { %2427 = vmatpush1.bf16.msra.mxu0 %v2388_v36  ;;  %2188 = vmatprep.mubr.bf16.mxu1 %v3083_v5  ;;  %v2386_v34 = vsel %vm2385_vm13, %v2362_v26, %v2364_v44  ;;  %v703_v26 = vadd.f32 %v669_v51, %v3749_v25 }
 0x197   : > { %2446 = vmatprep.mubr.bf16.mxu0 %v3083_v5 }
 0x198   : > { %v2366_v30 = vpop.permute.xlu1 %2365 }
 0x199   : > { %v2387_v37 = vsel %vm2385_vm13, %v2364_v44, %v2366_v30 }
 0x19a   : > { %2428 = vmatprep.subr.bf16.mxu0 %v2387_v37 }
 0x19b   : > { %2429 = vmatpush1.bf16.msra.mxu0 %v2386_v34 }
 0x19d   : > { %2927 = vmatmul.mubr.msk.bf16.gmra.mxu1 %vm363_vm0, %v3052_v14 }
 0x19e   : > { %2953 = vmatmul.mubr.msk.bf16.vlgmr.msra.gmra.mxu0 %vm363_vm0, %v3053_v49  ;;  %2198 = vmatprep.mubr.bf16.mxu1 %v3083_v5 }
 0x19f   : > { %2456 = vmatprep.mubr.bf16.mxu0 %v3083_v5 }
 0x1a5   : > { %2928 = vmatmul.mubr.msk.bf16.gmra.mxu1 %vm363_vm0, %v3054_v38 }
 0x1a6   : > { %2954 = vmatmul.mubr.msk.bf16.gmra.mxu0 %vm363_vm0, %v3055_v41 }
 0x1a7   : > { %2466 = vmatprep.mubr.bf16.mxu0 %v3083_v5 }
 0x1ae   : > { %2955 = vmatmul.mubr.msk.bf16.gmra.mxu0 %vm363_vm0, %v3056_v31 }
 0x1af   : > { %2476 = vmatprep.mubr.bf16.mxu0 %v3083_v5  ;;  %v426_v5 = vpop.f32.mrf.mxu0 }
 0x1b6   : > { %2956 = vmatmul.mubr.msk.bf16.gmra.mxu0 %vm363_vm0, %v3057_v43 }
 0x1e7   : > { %v3879_v42 = vpop.f32.mrf.mxu1 }
 0x1e9   : > { %v3881_v60 = vpop.f32.mrf.mxu1 }
 0x1eb   : > { %v3883_v12 = vpop.f32.mrf.mxu1 }
 0x1ed   : > { %v3885_v57 = vpop.f32.mrf.mxu1 }
 0x1ef   : > { %v3887_v19 = vpop.f32.mrf.mxu1 }
 0x1f1   : > { %v3889_v20 = vpop.f32.mrf.mxu1 }
 0x1f3   : > { %v3891_v24 = vpop.f32.mrf.mxu1 }
 0x1f5   : > { %v3899_v10 = vpop.f32.mrf.mxu1 }
 0x1f7   : > { %v3907_v16 = vpop.f32.mrf.mxu1 }
 0x1f9   : > { %v3915_v0 = vpop.f32.mrf.mxu1 }
 0x1fd   : > { %v930_v11 = vpop.f32.mrf.mxu0 }
 0x1fe   : > { %v3894_v40 = vadd.f32 %v930_v11, %v3762_v55 }
 0x1ff   : > { %v932_v59 = vpop.f32.mrf.mxu0 }
 0x200   : > { %v3897_v17 = vadd.f32 %v932_v59, %v3772_v46 }
 0x201   : > { %v934_v62 = vpop.f32.mrf.mxu0 }
 0x202   : > { %v3902_v15 = vadd.f32 %v934_v62, %v3778_v56  ;;  %v695_v56 = vadd.f32 %v3801_v48, %v426_v5  ;;  %v698_v48 = vadd.f32 %v3810_v7, %v3705_v6 }
 0x203   : > { %v936_v1 = vpop.f32.mrf.mxu0 }
 0x204   : > { %v3905_v8 = vadd.f32 %v936_v1, %v3781_v39 }
 0x205   : > { %v940_v3 = vpop.f32.mrf.mxu0 }
 0x206   : > { %v3910_v55 = vadd.f32 %v940_v3, %v3786_v22  ;;  %v3925_v22 = vpop.f32.mrf.mxu1 }
 0x207   : > { %v942_v18 = vpop.f32.mrf.mxu0 }
 0x208   : > { %v3913_v46 = vadd.f32 %v942_v18, %v3792_v61  ;;  %v697_v61 = vadd.f32 %v3808_v63, %v3698_v50  ;;  %v3935_v44 = vpop.f32.mrf.mxu1 }
 0x209   : > { %v944_v58 = vpop.f32.mrf.mxu0  ;;  %4159 = vst [vmem:[#allocation2_spill] sm:$0xff] %v3935_v44 }
 0x20a   : > { %v3919_v2 = vadd.f32 %v944_v58, %v3798_v35  ;;  %v3942_v32 = vpop.f32.mrf.mxu1 }
 0x20b   : > { %v946_v39 = vpop.f32.mrf.mxu0  ;;  %4161 = vst [vmem:[#allocation4_spill] sm:$0xff] %v3942_v32  ;;  %v1263_v32 = vadd.f32 %v3879_v42, %v3894_v40  ;;  %v1266_v42 = vadd.f32 %v3885_v57, %v3905_v8  ;;  %v1268_v57 = vadd.f32 %v3889_v20, %v3913_v46 }
 0x20c   : > { %v3923_v47 = vadd.f32 %v946_v39, %v695_v56  ;;  %v3950_v7 = vpop.f32.mrf.mxu1 }
 0x20d   : > { %v950_v28 = vpop.f32.mrf.mxu0  ;;  %4164 = vst [vmem:[#allocation7_spill] sm:$0xff] %v3950_v7 }
 0x20e   : > { %v3929_v29 = vadd.f32 %v950_v28, %v696_v21  ;;  %v3958_v14 = vpop.f32.mrf.mxu1 }
 0x20f   : > { %v952_v45 = vpop.f32.mrf.mxu0  ;;  %4167 = vst [vmem:[#allocation10_spill] sm:$0xff] %v3958_v14 }
 0x210   : > { %v3933_v35 = vadd.f32 %v952_v45, %v697_v61  ;;  %v3960_v49 = vpop.f32.mrf.mxu1 }
 0x211   : > { %v954_v53 = vpop.f32.mrf.mxu0  ;;  %4168 = vst [vmem:[#allocation11_spill] sm:$0xff] %v3960_v49 }
 0x212   : > { %v3937_v33 = vadd.f32 %v954_v53, %v698_v48 }
 0x213   : > { %v956_v9 = vpop.f32.mrf.mxu0 }
 0x214   : > { %v3940_v13 = vadd.f32 %v956_v9, %v3820_v27 }
 0x215   : > { %v960_v50 = vpop.f32.mrf.mxu0 }
 0x216   : > { %4160 = vst [vmem:[#allocation3_spill] sm:$0xff] %v3940_v13  ;;  %v3945_v63 = vadd.f32 %v960_v50, %v3826_v52 }
 0x217   : > { %v962_v4 = vpop.f32.mrf.mxu0 }
 0x218   : > { %4162 = vst [vmem:[#allocation5_spill] sm:$0xff] %v3945_v63  ;;  %v3948_v6 = vadd.f32 %v962_v4, %v3832_v54 }
 0x219   : > { %v964_v36 = vpop.f32.mrf.mxu0 }
 0x21a   : > { %4163 = vst [vmem:[#allocation6_spill] sm:$0xff] %v3948_v6  ;;  %v3954_v30 = vadd.f32 %v964_v36, %v3842_v23 }
 0x21b   : > { %v966_v27 = vpop.f32.mrf.mxu0 }
 0x21c   : > { %4165 = vst [vmem:[#allocation8_spill] sm:$0xff] %v3954_v30  ;;  %v3956_v37 = vadd.f32 %v966_v27, %v703_v26 }
 0x21d   : > { %v1411_v34 = vpop.f32.mrf.mxu0 }
 0x21e   : > { %4166 = vst [vmem:[#allocation9_spill] sm:$0xff] %v3956_v37 }
 0x21f   : > { %v1413_v52 = vpop.f32.mrf.mxu0 }
 0x221   : > { %v1415_v38 = vpop.f32.mrf.mxu0 }
 0x222   : > { %v1689_v54 = vpop.f32.mrf.mxu1 }
 0x223   : > { %v3962_v41 = vpop.f32.mrf.mxu0 }
 0x224   : > { %v1691_v31 = vpop.f32.mrf.mxu1 }
 0x225   : > { %v3964_v43 = vpop.f32.mrf.mxu0 }
 0x226   : > { %v1693_v25 = vpop.f32.mrf.mxu1 }
 0x227   : > { %v3966_v51 = vpop.f32.mrf.mxu0 }
 0x228   : > { %v3968_v23 = vpop.f32.mrf.mxu1 }
 0x229   : > { %v3970_v5 = vpop.f32.mrf.mxu0 }
 0x22a   : > { %v3972_v11 = vpop.f32.mrf.mxu1 }
 0x22b   : > { %v3974_v59 = vpop.f32.mrf.mxu0 }
 0x22c   : > { %v3976_v62 = vpop.f32.mrf.mxu1 }
 0x22d   : > { %v3978_v1 = vpop.f32.mrf.mxu0 }
 0x22e   : > { %v3980_v3 = vpop.f32.mrf.mxu1 }
 0x22f   : > { %v3982_v18 = vpop.f32.mrf.mxu0 }
 0x230   : > { %v3984_v58 = vpop.f32.mrf.mxu1 }
 0x231   : > { %v3986_v56 = vpop.f32.mrf.mxu0 }
 0x232   : > { %4169 = vst [vmem:[#allocation12_spill] sm:$0xff] %v3986_v56 }
 0x233   : > { %v3988_v39 = vpop.f32.mrf.mxu0  ;;  %v3990_v21 = vpop.f32.mrf.mxu1 }
 0x234   : > { %4170 = vst [vmem:[#allocation13_spill] sm:$0xff] %v3988_v39 }
 0x235   : > { %v3992_v28 = vpop.f32.mrf.mxu0  ;;  %v3994_v61 = vpop.f32.mrf.mxu1 }
 0x236   : > { %4171 = vst [vmem:[#allocation14_spill] sm:$0xff] %v3992_v28  ;;  %4172 = vst [vmem:[#allocation15_spill] sm:$0xff] %v3994_v61  ;;  %v1264_v61 = vadd.f32 %v3881_v60, %v3897_v17 }
 0x237   : > { %v3996_v45 = vpop.f32.mrf.mxu0  ;;  %v3998_v48 = vpop.f32.mrf.mxu1 }
 0x238   : > { %4173 = vst [vmem:[#allocation16_spill] sm:$0xff] %v3996_v45  ;;  %4174 = vst [vmem:[#allocation17_spill] sm:$0xff] %v3998_v48  ;;  %v1467_v44 = vadd.f32 %v1413_v52, %v1264_v61 }
 0x239   : > { %v4000_v53 = vpop.f32.mrf.mxu0  ;;  %v4004_v50 = vpop.f32.mrf.mxu1 }
 0x23a   : > { %4175 = vst [vmem:[#allocation18_spill] sm:$0xff] %v4000_v53  ;;  %4177 = vst [vmem:[#allocation20_spill] sm:$0xff] %v4004_v50  ;;  %v1745_v60 = vadd.f32 %v1691_v31, %v1467_v44 }
 0x23b   : > { %v4002_v9 = vpop.f32.mrf.mxu0  ;;  %v4006_v36 = vpop.f32.mrf.mxu1 }
 0x23c   : > { %4176 = vst [vmem:[#allocation19_spill] sm:$0xff] %v4002_v9  ;;  %4178 = vst [vmem:[#allocation21_spill] sm:$0xff] %v4006_v36 }
 0x23d   : > { %v1967_v4 = vpop.f32.mrf.mxu0  ;;  %v4008_v49 = vpop.f32.mrf.mxu1 }
 0x23e   : > { %4179 = vst [vmem:[#allocation22_spill] sm:$0xff] %v4008_v49 }
 0x23f   : > { %v1969_v26 = vpop.f32.mrf.mxu0  ;;  %v4010_v30 = vpop.f32.mrf.mxu1 }
 0x240   : > { %4180 = vst [vmem:[#allocation23_spill] sm:$0xff] %v4010_v30 }
 0x241   : > { %v1971_v27 = vpop.f32.mrf.mxu0  ;;  %v4016_v53 = vpop.f32.mrf.mxu1 }
 0x242   : > { %4181 = vst [vmem:[#allocation24_spill] sm:$0xff] %v4016_v53 }
 0x243   : > { %v1973_v37 = vpop.f32.mrf.mxu0 }
 0x245   : > { %v1977_v14 = vpop.f32.mrf.mxu0 }
 0x247   : > { %v4012_v45 = vpop.f32.mrf.mxu0 }
 0x249   : > { %v4014_v28 = vpop.f32.mrf.mxu0 }
 0x24b   : > { %v4018_v9 = vpop.f32.mrf.mxu0 }
 0x24c   : > { %4182 = vst [vmem:[#allocation25_spill] sm:$0xff] %v4018_v9 }
 0x24d   : > { %v4020_v50 = vpop.f32.mrf.mxu0  ;;  %v2170_v7 = vpop.f32.mrf.mxu1 }
 0x24e   : > { %4183 = vst [vmem:[#allocation26_spill] sm:$0xff] %v4020_v50  ;;  %v1466_v50 = vadd.f32 %v1411_v34, %v1263_v32 }
 0x24f   : > { %v4022_v36 = vpop.f32.mrf.mxu0  ;;  %v2172_v6 = vpop.f32.mrf.mxu1 }
 0x250   : > { %4184 = vst [vmem:[#allocation27_spill] sm:$0xff] %v4022_v36 }
 0x251   : > { %v4024_v48 = vpop.f32.mrf.mxu0  ;;  %v2174_v49 = vpop.f32.mrf.mxu1 }
 0x252   : > { %4185 = vst [vmem:[#allocation28_spill] sm:$0xff] %v4024_v48  ;;  %v1265_v48 = vadd.f32 %v3883_v12, %v3902_v15  ;;  %v1267_v12 = vadd.f32 %v3887_v19, %v3910_v55  ;;  %v1469_v15 = vadd.f32 %v3962_v41, %v1266_v42  ;;  %v2562_v19 = vpop.permute.xlu1 %2561  ;;  %v1269_v55 = vadd.f32 %v3891_v24, %v3919_v2 }
 0x253   : > { %v4026_v39 = vpop.f32.mrf.mxu0  ;;  %v2176_v30 = vpop.f32.mrf.mxu1 }
 0x254   : > { %4186 = vst [vmem:[#allocation29_spill] sm:$0xff] %v4026_v39  ;;  %v1744_v39 = vadd.f32 %v1689_v54, %v1466_v50  ;;  %v1468_v40 = vadd.f32 %v1415_v38, %v1265_v48  ;;  %v2023_v54 = vadd.f32 %v1969_v26, %v1745_v60  ;;  %v1470_v8 = vadd.f32 %v3964_v43, %v1267_v12 }
 0x255   : > { %v4030_v63 = vpop.f32.mrf.mxu0  ;;  %v2180_v53 = vpop.f32.mrf.mxu1  ;;  %v1747_v38 = vadd.f32 %v3968_v23, %v1469_v15  ;;  %v1472_v24 = vadd.f32 %v3970_v5, %v1269_v55  ;;  %v4190_v55 = vld [vmem:[#allocation12_spill] sm:$0xff] }
 0x256   : > { %v2022_v17 = vadd.f32 %v1967_v4, %v1744_v39  ;;  %v1746_v52 = vadd.f32 %v1693_v25, %v1468_v40  ;;  %v2226_v39 = vadd.f32 %v2172_v6, %v2023_v54  ;;  %v1748_v41 = vadd.f32 %v3972_v11, %v1470_v8  ;;  %v2567_v11 = vpop.permute.xlu0 %2566  ;;  %v2572_v15 = vpop.permute.xlu1 %2571 }
 0x257   : > { %v4034_v56 = vpop.f32.mrf.mxu0  ;;  %v4036_v36 = vpop.f32.mrf.mxu1  ;;  %v2025_v46 = vadd.f32 %v1973_v37, %v1747_v38  ;;  %v1270_v6 = vadd.f32 %v3899_v10, %v3923_v47  ;;  %v1271_v40 = vadd.f32 %v3907_v16, %v3929_v29 }
 0x258   : > { %v2225_v61 = vadd.f32 %v2170_v7, %v2022_v17  ;;  %v2024_v31 = vadd.f32 %v1971_v27, %v1746_v52  ;;  %v1471_v7 = vadd.f32 %v3966_v51, %v1268_v57  ;;  %v2026_v51 = vadd.f32 %v1977_v14, %v1748_v41 }
 0x259   : > { %v4040_v13 = vpop.f32.mrf.mxu0  ;;  %v4042_v9 = vpop.f32.mrf.mxu1  ;;  %v2228_v37 = vadd.f32 %v2176_v30, %v2025_v46  ;;  %v1473_v60 = vadd.f32 %v3974_v59, %v1270_v6  ;;  %v1750_v17 = vadd.f32 %v3980_v3, %v1472_v24  ;;  %v1272_v52 = vadd.f32 %v3915_v0, %v3933_v35  ;;  %v4187_v35 = vld [vmem:[#allocation25_spill] sm:$0xff]  ;;  %v4194_v6 = vld [vmem:[#allocation4_spill] sm:$0xff] }
 0x25a   : > { %v2227_v43 = vadd.f32 %v2174_v49, %v2024_v31  ;;  %v1749_v2 = vadd.f32 %v3976_v62, %v1471_v7  ;;  %v2229_v5 = vadd.f32 %v2180_v53, %v2026_v51  ;;  %v1474_v16 = vadd.f32 %v3978_v1, %v1271_v40  ;;  %v4192_v7 = vld [vmem:[#allocation26_spill] sm:$0xff] }
 0x25b   : > { %v4046_v32 = vpop.f32.mrf.mxu0  ;;  %v4048_v34 = vpop.f32.mrf.mxu1  ;;  %v1751_v29 = vadd.f32 %v3984_v58, %v1473_v60  ;;  %v2028_v59 = vadd.f32 %v4014_v28, %v1750_v17  ;;  %v1273_v57 = vadd.f32 %v3925_v22, %v3937_v33  ;;  %v1475_v8 = vadd.f32 %v3982_v18, %v1272_v52  ;;  %v4191_v33 = vld [vmem:[#allocation15_spill] sm:$0xff]  ;;  %v4202_v52 = vld [vmem:[#allocation28_spill] sm:$0xff] }
 0x25c   : > { %v2027_v10 = vadd.f32 %v4012_v45, %v1749_v2  ;;  %v1752_v0 = vadd.f32 %v3990_v21, %v1474_v16  ;;  %v4195_v2 = vld [vmem:[#allocation13_spill] sm:$0xff] }
 0x25d   : > { %v4053_v50 = vpop.f32.mrf.mxu1  ;;  %v2029_v1 = vadd.f32 %v4187_v35, %v1751_v29  ;;  %v1476_v22 = vadd.f32 %v4190_v55, %v1273_v57  ;;  %v1753_v18 = vadd.f32 %v4191_v33, %v1475_v8  ;;  %v4205_v8 = vld [vmem:[#allocation16_spill] sm:$0xff]  ;;  %v4206_v35 = vld [vmem:[#allocation21_spill] sm:$0xff]  ;;  %v4209_v55 = vld [vmem:[#allocation11_spill] sm:$0xff] }
 0x25e   : > { %v2448_v44 = vpop.f32.mrf.mxu0  ;;  %v2230_v45 = vadd.f32 %v4036_v36, %v2027_v10  ;;  %v2030_v21 = vadd.f32 %v4192_v7, %v1752_v0  ;;  %v4198_v10 = vld [vmem:[#allocation6_spill] sm:$0xff] }
 0x25f   : > { %v2503_v48 = vadd.f32 %v2448_v44, %v2225_v61  ;;  %v4064_v25 = vpop.f32.mrf.mxu1  ;;  %v2231_v44 = vadd.f32 %v4042_v9, %v2028_v59  ;;  %v2582_v59 = vpop.permute.xlu0 %2581  ;;  %v4210_v33 = vld [vmem:[#allocation18_spill] sm:$0xff] }
 0x260   : > { %v2450_v20 = vpop.f32.mrf.mxu0  ;;  %v2233_v40 = vadd.f32 %v4053_v50, %v2030_v21  ;;  %v4211_v7 = vld [vmem:[#allocation22_spill] sm:$0xff] }
 0x261   : > { %v2504_v4 = vadd.f32 %v2450_v20, %v2226_v39  ;;  %v2599_v26 = vadd.f32 %v2562_v19, %v2503_v48  ;;  %v4080_v47 = vpop.f32.mrf.mxu1  ;;  %v4188_v39 = vld [vmem:[#allocation3_spill] sm:$0xff]  ;;  %v4189_v48 = vld [vmem:[#allocation2_spill] sm:$0xff]  ;;  %v2232_v20 = vadd.f32 %v4048_v34, %v2029_v1 }
 0x262   : > { %v2452_v23 = vpop.f32.mrf.mxu0 }
 0x263   : > { %v2505_v49 = vadd.f32 %v2452_v23, %v2227_v43  ;;  %v2600_v27 = vadd.f32 %v2562_v19, %v2504_v4  ;;  %v2615_v42 = vmax.f32 %v2599_v26, 0.0  ;;  %v2196_v58 = vpop.f32.mrf.mxu1  ;;  %v1274_v19 = vadd.f32 %v4189_v48, %v4188_v39  ;;  %v2577_v4 = vpop.permute.xlu1 %2576  ;;  %v4193_v26 = vld [vmem:[#allocation5_spill] sm:$0xff] }
 0x264   : > { %v2454_v14 = vpop.f32.mrf.mxu0  ;;  %v1275_v24 = vadd.f32 %v4194_v6, %v4193_v26  ;;  %v4196_v23 = vld [vmem:[#allocation17_spill] sm:$0xff]  ;;  %v4212_v26 = vld [vmem:[#allocation19_spill] sm:$0xff] }
 0x265   : > { %v2506_v62 = vadd.f32 %v2454_v14, %v2228_v37  ;;  %v2616_v12 = vmax.f32 %v2600_v27, 0.0  ;;  %2631 = vst [vmem:[%s4069_s14] sm:$0xff] %v2615_v42  ;;  %v2601_v30 = vadd.f32 %v2567_v11, %v2505_v49  ;;  %v1477_v51 = vadd.f32 %v4195_v2, %v1274_v19  ;;  %v4197_v37 = vld [vmem:[#allocation27_spill] sm:$0xff]  ;;  %v2200_v27 = vpop.f32.mrf.mxu1  ;;  %v4208_v19 = vld [vmem:[#allocation9_spill] sm:$0xff] }
 0x266   : > { %v2458_v3 = vpop.f32.mrf.mxu0  ;;  %v2031_v49 = vadd.f32 %v4197_v37, %v1753_v18  ;;  %v4199_v14 = vld [vmem:[#allocation7_spill] sm:$0xff] }
 0x267   : > { %v2507_v54 = vadd.f32 %v2458_v3, %v2229_v5  ;;  %2632 = vst [vmem:[%s4069_s14 + $0x8] sm:$0xff] %v2616_v12  ;;  %v2602_v53 = vadd.f32 %v2567_v11, %v2506_v62  ;;  %v2617_v61 = vmax.f32 %v2601_v30, 0.0  ;;  %v1754_v11 = vadd.f32 %v4196_v23, %v1476_v22  ;;  %v4200_v62 = vld [vmem:[#allocation14_spill] sm:$0xff]  ;;  %v4201_v30 = vld [vmem:[#allocation20_spill] sm:$0xff] }
 0x268   : > { %v2460_v28 = vpop.f32.mrf.mxu0  ;;  %v1276_v5 = vadd.f32 %v4199_v14, %v4198_v10  ;;  %v1478_v12 = vadd.f32 %v4200_v62, %v1275_v24  ;;  %v2234_v3 = vadd.f32 %v4064_v25, %v2031_v49  ;;  %v1278_v22 = vadd.f32 %v4209_v55, %v4208_v19  ;;  %v4213_v24 = vld [vmem:[#allocation23_spill] sm:$0xff] }
 0x269   : > { %v2508_v38 = vadd.f32 %v2460_v28, %v2230_v45  ;;  %v2618_v36 = vmax.f32 %v2602_v53, 0.0  ;;  %2633 = vst [vmem:[%s4069_s14 + $0x10] sm:$0xff] %v2617_v61  ;;  %v2603_v31 = vadd.f32 %v2572_v15, %v2507_v54  ;;  %v2032_v16 = vadd.f32 %v4202_v52, %v1754_v11  ;;  %v4203_v53 = vld [vmem:[#allocation8_spill] sm:$0xff]  ;;  %v4204_v61 = vld [vmem:[#allocation10_spill] sm:$0xff]  ;;  %v4207_v28 = vld [vmem:[#allocation29_spill] sm:$0xff] }
 0x26a   : > { %v2462_v41 = vpop.f32.mrf.mxu0  ;;  %v1277_v57 = vadd.f32 %v4204_v61, %v4203_v53  ;;  %v1479_v0 = vadd.f32 %v4205_v8, %v1276_v5  ;;  %v1756_v1 = vadd.f32 %v4206_v35, %v1478_v12  ;;  %v1481_v6 = vadd.f32 %v4212_v26, %v1278_v22 }
 0x26b   : > { %v2509_v46 = vadd.f32 %v2462_v41, %v2231_v44  ;;  %2634 = vst [vmem:[%s4069_s14 + $0x18] sm:$0xff] %v2618_v36  ;;  %v2604_v9 = vadd.f32 %v2572_v15, %v2508_v38  ;;  %v2619_v43 = vmax.f32 %v2603_v31, 0.0  ;;  %v1755_v15 = vadd.f32 %v4201_v30, %v1477_v51  ;;  %v2202_v38 = vpop.f32.mrf.mxu1 }
 0x26c   : > { %v2464_v42 = vpop.f32.mrf.mxu0  ;;  %v2235_v31 = vadd.f32 %v4080_v47, %v2032_v16  ;;  %v1480_v18 = vadd.f32 %v4210_v33, %v1277_v57  ;;  %v1757_v21 = vadd.f32 %v4211_v7, %v1479_v0  ;;  %v2034_v41 = vadd.f32 %v4030_v63, %v1756_v1 }
 0x26d   : > { %v2510_v34 = vadd.f32 %v2464_v42, %v2232_v20  ;;  %v2620_v60 = vmax.f32 %v2604_v9, 0.0  ;;  %2635 = vst [vmem:[%s4069_s14 + $0x20] sm:$0xff] %v2619_v43  ;;  %v2605_v17 = vadd.f32 %v2577_v4, %v2509_v46  ;;  %v2033_v44 = vadd.f32 %v4207_v28, %v1755_v15  ;;  %v2204_v23 = vpop.f32.mrf.mxu1 }
 0x26e   : > { %v2468_v29 = vpop.f32.mrf.mxu0  ;;  %v1758_v2 = vadd.f32 %v4213_v24, %v1480_v18  ;;  %v2035_v51 = vadd.f32 %v4034_v56, %v1757_v21  ;;  %v2237_v37 = vadd.f32 %v2200_v27, %v2034_v41  ;;  %v2592_v56 = vpop.permute.xlu0 %2591 }
 0x26f   : > { %v2511_v45 = vadd.f32 %v2468_v29, %v2233_v40  ;;  %2636 = vst [vmem:[%s4069_s14 + $0x28] sm:$0xff] %v2620_v60  ;;  %v2606_v50 = vadd.f32 %v2577_v4, %v2510_v34  ;;  %v2621_v54 = vmax.f32 %v2605_v17, 0.0  ;;  %v2236_v46 = vadd.f32 %v2196_v58, %v2033_v44  ;;  %v2587_v4 = vpop.permute.xlu1 %2586  ;;  %v4214_v58 = vld [vmem:[#allocation24_spill] sm:$0xff]  ;;  %v2206_v27 = vpop.f32.mrf.mxu1 }
 0x270   : > { %v2470_v36 = vpop.f32.mrf.mxu0  ;;  %v1759_v40 = vadd.f32 %v4214_v58, %v1481_v6  ;;  %v2036_v34 = vadd.f32 %v4040_v13, %v1758_v2  ;;  %v2238_v17 = vadd.f32 %v2202_v38, %v2035_v51 }
 0x271   : > { %v2512_v39 = vadd.f32 %v2470_v36, %v2234_v3  ;;  %v2622_v25 = vmax.f32 %v2606_v50, 0.0  ;;  %2637 = vst [vmem:[%s4069_s14 + $0x30] sm:$0xff] %v2621_v54  ;;  %v2607_v48 = vadd.f32 %v2582_v59, %v2511_v45 }
 0x272   : > { %v2472_v20 = vpop.f32.mrf.mxu0  ;;  %v2037_v62 = vadd.f32 %v4046_v32, %v1759_v40  ;;  %v2239_v30 = vadd.f32 %v2204_v23, %v2036_v34 }
 0x273   : > { %v2513_v9 = vadd.f32 %v2472_v20, %v2235_v31  ;;  %2638 = vst [vmem:[%s4069_s14 + $0x38] sm:$0xff] %v2622_v25  ;;  %v2608_v43 = vadd.f32 %v2582_v59, %v2512_v39  ;;  %v2623_v47 = vmax.f32 %v2607_v48, 0.0  ;;  %v2597_v54 = vpop.permute.xlu1 %2596 }
 0x274   : > { %v2474_v11 = vpop.f32.mrf.mxu0  ;;  %v2240_v29 = vadd.f32 %v2206_v27, %v2037_v62 }
 0x275   : > { %v2514_v49 = vadd.f32 %v2474_v11, %v2236_v46  ;;  %v2624_v63 = vmax.f32 %v2608_v43, 0.0  ;;  %2639 = vst [vmem:[%s4069_s14 + $0x40] sm:$0xff] %v2623_v47  ;;  %v2609_v42 = vadd.f32 %v2587_v4, %v2513_v9 }
 0x276   : > { %v2478_v60 = vpop.f32.mrf.mxu0 }
 0x277   : > { %v2515_v10 = vadd.f32 %v2478_v60, %v2237_v37  ;;  %2640 = vst [vmem:[%s4069_s14 + $0x48] sm:$0xff] %v2624_v63  ;;  %v2610_v14 = vadd.f32 %v2587_v4, %v2514_v49  ;;  %v2625_v5 = vmax.f32 %v2609_v42, 0.0 }
 0x278   : > { %v2480_v12 = vpop.f32.mrf.mxu0 }
 0x279   : > { %v2516_v15 = vadd.f32 %v2480_v12, %v2238_v17  ;;  %v2626_v52 = vmax.f32 %v2610_v14, 0.0  ;;  %2641 = vst [vmem:[%s4069_s14 + $0x50] sm:$0xff] %v2625_v5  ;;  %v2611_v16 = vadd.f32 %v2592_v56, %v2515_v10 }
 0x27a   : > { %v2482_v13 = vpop.f32.mrf.mxu0 }
 0x27b   : > { %v2517_v59 = vadd.f32 %v2482_v13, %v2239_v30  ;;  %2642 = vst [vmem:[%s4069_s14 + $0x58] sm:$0xff] %v2626_v52  ;;  %v2612_v3 = vadd.f32 %v2592_v56, %v2516_v15  ;;  %v2627_v45 = vmax.f32 %v2611_v16, 0.0 }
 0x27c   : > { %v2484_v50 = vpop.f32.mrf.mxu0 }
 0x27d   : > { %v2518_v32 = vadd.f32 %v2484_v50, %v2240_v29  ;;  %v2613_v53 = vadd.f32 %v2597_v54, %v2517_v59  ;;  %v2628_v61 = vmax.f32 %v2612_v3, 0.0  ;;  %2643 = vst [vmem:[%s4069_s14 + $0x60] sm:$0xff] %v2627_v45 }
 0x27f   : > { %v2614_v57 = vadd.f32 %v2597_v54, %v2518_v32  ;;  %v2629_v8 = vmax.f32 %v2613_v53, 0.0  ;;  %2644 = vst [vmem:[%s4069_s14 + $0x68] sm:$0xff] %v2628_v61 }
 0x281   : > { %v2630_v0 = vmax.f32 %v2614_v57, 0.0  ;;  %2645 = vst [vmem:[%s4069_s14 + $0x70] sm:$0xff] %v2629_v8 }
 0x283   : > { %2646 = vst [vmem:[%s4069_s14 + $0x78] sm:$0xff] %v2630_v0 }
 0x284 PF: > { %s14_s17 = sadd.s32 1, %s3080_s17   ;;  %s4215_s15 = smov %s3076_s16 }
 0x285   : > { %p11_p5 = scmp.ge.s32.totalorder %s14_s17, 4   ;;  %s4216_s16 = smov %s4218_s18 }
 0x287   :  { %13 = sbr.rel (!%p11_p5) target bundleno = 2 (0x2), region = 75 }

</bundles_post_ra>
